<compile_context>
chip_gen: v7x
topology: tpu7x:2x2x1
jax: 0.10.0
libtpu: 0.0.40
codegen_flags: <defaults>
</compile_context>

<pallas_src>
import functools

import jax
import jax.numpy as jnp
from jax import lax
from jax.experimental import pallas as pl
from jax.experimental.pallas import tpu as pltpu

GROUPS = 32     # normalization(ch) == GroupNorm(32, ch) in the reference code
EPS = 1e-5
LANE = 128


def _round_up(v, m):
    return (v + m - 1) // m * m


def _const_spec(shape):
    """Grid-invariant full-array operand: single-buffered (double-buffering a constant
    block only doubles its VMEM residency)."""
    nd = len(shape)
    index_map = lambda n, c: (0,) * nd
    if hasattr(pl, "Buffered"):
        return pl.BlockSpec(shape, index_map, pipeline_mode=pl.Buffered(1))
    return pl.BlockSpec(shape, index_map)


def _pass1_kernel(x_ref, sc1_ref, sh1_ref, w1_ref, cb1_ref, h_ref, st_ref):
    # in_layers: GN1 (pre-fused scale/shift FMA) -> SiLU -> 1x1 conv (bf16 MXU, f32 acc)
    a = x_ref[0].astype(jnp.float32) * sc1_ref[0] + sh1_ref[0]
    a = a * jax.nn.sigmoid(a)
    h = jnp.dot(a.astype(jnp.bfloat16), w1_ref[...],
                preferred_element_type=jnp.float32) + cb1_ref[...]
    h_ref[0] = h.astype(h_ref.dtype)
    # per-chunk channel sums for GroupNorm-2 (f32, reduced over chunks in the wrapper)
    st_ref[0, 0] = jnp.concatenate(
        [jnp.sum(h, axis=0, keepdims=True),
         jnp.sum(h * h, axis=0, keepdims=True)], axis=0)


def _make_pass2_kernel(W, chunk_rows):
    CP = chunk_rows * W          # pixels per chunk
    L = CP + 2 * W               # pixels including one halo row above and below

    def kernel(hm_ref, ht_ref, hb_ref, x_ref, sc2_ref, sh2_ref,
               w2_ref, ws_ref, bias_ref, o_ref):
        c = pl.program_id(1)
        last = pl.num_programs(1) - 1
        sc2 = sc2_ref[0]
        sh2 = sh2_ref[0]

        def norm_silu(v):        # GN2 affine (pre-fused FMA) + SiLU, in f32
            v = v.astype(jnp.float32) * sc2 + sh2
            return v * jax.nn.sigmoid(v)

        # TODO(synk): Dropout is eval-mode identity here (p only matters in training).
        top = norm_silu(ht_ref[0])
        bot = norm_silu(hb_ref[0])
        zrow = jnp.zeros_like(top)
        top = jnp.where(c > 0, top, zrow)        # zero halo == conv zero padding
        bot = jnp.where(c < last, bot, zrow)
        # halo'd activation: [row above | chunk rows | row below], sublane-aligned
        full = jnp.concatenate([top, norm_silu(hm_ref[0]), bot], axis=0)   # (L, C) f32

        col = lax.broadcasted_iota(jnp.int32, (L, 1), 0) % W
        f = full.astype(jnp.bfloat16)
        zf = jnp.zeros_like(f)
        # horizontal +-1-pixel taps: two sublane rolls (XLU); boundary masks in bf16
        f_l = jnp.where(col >= 1, pltpu.roll(full, 1, 0).astype(jnp.bfloat16), zf)
        f_r = jnp.where(col <= W - 2,
                        pltpu.roll(full, L - 1, 0).astype(jnp.bfloat16), zf)

        # skip (1x1 conv) + 3x3 conv as nine accumulating bf16 dots into one f32 acc
        acc = jnp.dot(x_ref[0], ws_ref[...], preferred_element_type=jnp.float32)
        srcs = (f_l, f, f_r)                     # indexed by kw (dw = kw - 1)
        for kh in range(3):
            for kw in range(3):
                tap = srcs[kw][kh * W:kh * W + CP, :]          # aligned sublane slice
                acc = acc + jnp.dot(tap, w2_ref[kh * 3 + kw],
                                    preferred_element_type=jnp.float32)
        o_ref[0] = (acc + bias_ref[...]).astype(o_ref.dtype)   # lane-dense store

    return kernel


def _pass2_vmem_bytes(chunk_rows, W, cin_p, cout_p):
    cp = chunk_rows * W
    halo = cp + 2 * W
    blocks = 2 * (cp * cout_p * 2 + 2 * W * cout_p * 2      # h chunk + halo rows (bf16)
                  + cp * cin_p * 2                           # x chunk (bf16)
                  + cp * cout_p * 4)                         # out chunk (f32)
    consts = 9 * cout_p * cout_p * 2 + cin_p * cout_p * 2 + cout_p * 4
    temps = halo * cout_p * 4 + 3 * halo * cout_p * 2 + 2 * cp * cout_p * 4
    return blocks + consts + temps


def _pick_chunk_rows(H, W, cin_p, cout_p, budget):
    best = 1
    for r in range(1, H + 1):
        if H % r == 0 and _pass2_vmem_bytes(r, W, cin_p, cout_p) <= budget:
            best = r
    return best


@functools.partial(jax.jit, static_argnames=("chunk_rows",))
def resblock_pallas(x_nchw, params, chunk_rows=None):
    (gn1_w, gn1_b, c1_w, c1_b, gn2_w, gn2_b, c2_w, c2_b, cs_w, cs_b) = params
    N, Cin, H, W = x_nchw.shape
    Cout = c1_w.shape[0]
    HW = H * W
    assert Cin % GROUPS == 0 and Cout % GROUPS == 0
    assert W % 8 == 0, "sublane tiling of row blocks needs W % 8 == 0"
    Cin_p = _round_up(Cin, LANE)
    Cout_p = _round_up(Cout, LANE)

    # generation-aware VMEM budget: ~85% of physical (v7x 64 MiB -> ~54, v5e/v6e -> ~108)
    try:
        phys_vmem = int(pltpu.get_tpu_info().vmem_capacity_bytes)
    except Exception:
        phys_vmem = 128 << 20
    vmem_cap = int(phys_vmem * 0.85)

    if chunk_rows is None:
        chunk_rows = _pick_chunk_rows(H, W, Cin_p, Cout_p, budget=vmem_cap // 3)
    assert H % chunk_rows == 0
    R = chunk_rows
    n_chunks = H // R
    CP = R * W
    vmem_limit = int(min(vmem_cap,
                         max(32 << 20, 2 * _pass2_vmem_bytes(R, W, Cin_p, Cout_p))))

    def pad_last(a, target):
        pad = [(0, 0)] * (a.ndim - 1) + [(0, target - a.shape[-1])]
        return jnp.pad(a, pad)

    # activations: NCHW -> (N, HW, C) channels-last, lane-padded, bf16 across HBM
    x_l = jnp.transpose(x_nchw, (0, 2, 3, 1)).reshape(N, HW, Cin)
    x_l = pad_last(x_l, Cin_p).astype(jnp.bfloat16)

    # GroupNorm-1 stats pre-pass: plain-JAX reduce over x (f32, exact two-pass variance)
    cpg1 = Cin // GROUPS
    xg = x_nchw.astype(jnp.float32).reshape(N, GROUPS, cpg1, H, W)
    mu1 = xg.mean(axis=(2, 3, 4))
    var1 = jnp.mean(jnp.square(xg - mu1[:, :, None, None, None]), axis=(2, 3, 4))
    inv1 = lax.rsqrt(var1 + EPS)
    scale1 = jnp.repeat(inv1, cpg1, axis=1) * gn1_w[None, :].astype(jnp.float32)
    shift1 = gn1_b[None, :].astype(jnp.float32) - jnp.repeat(mu1, cpg1, axis=1) * scale1
    scale1 = pad_last(scale1, Cin_p).reshape(N, 1, Cin_p)
    shift1 = pad_last(shift1, Cin_p).reshape(N, 1, Cin_p)

    # weights: lane-padded, bf16 for the MXU; biases/affine rows stay f32
    w1 = jnp.pad(c1_w[:, :, 0, 0].T,
                 ((0, Cin_p - Cin), (0, Cout_p - Cout))).astype(jnp.bfloat16)
    cb1 = pad_last(c1_b.reshape(1, Cout).astype(jnp.float32), Cout_p)
    w2 = jnp.transpose(c2_w, (2, 3, 1, 0)).reshape(9, Cout, Cout)        # (kh*3+kw, I, O)
    w2 = jnp.pad(w2, ((0, 0), (0, Cout_p - Cout), (0, Cout_p - Cout))).astype(jnp.bfloat16)
    ws = jnp.pad(cs_w[:, :, 0, 0].T,
                 ((0, Cin_p - Cin), (0, Cout_p - Cout))).astype(jnp.bfloat16)
    bias = pad_last((c2_b + cs_b).reshape(1, Cout).astype(jnp.float32), Cout_p)

    cparams = pltpu.CompilerParams(
        dimension_semantics=("parallel", "parallel"),
        vmem_limit_bytes=vmem_limit)

    # ---- pass 1: h = conv1(SiLU(GN1(x))) per row-chunk, + GN2 partial sums ----
    h_flat, stats = pl.pallas_call(
        _pass1_kernel,
        out_shape=(jax.ShapeDtypeStruct((N, HW, Cout_p), jnp.bfloat16),
                   jax.ShapeDtypeStruct((N, n_chunks, 2, Cout_p), jnp.float32)),
        grid_spec=pltpu.PrefetchScalarGridSpec(
            num_scalar_prefetch=0,
            grid=(N, n_chunks),
            in_specs=[
                pl.BlockSpec((1, CP, Cin_p), lambda n, c: (n, c, 0)),
                pl.BlockSpec((1, 1, Cin_p), lambda n, c: (n, 0, 0)),
                pl.BlockSpec((1, 1, Cin_p), lambda n, c: (n, 0, 0)),
                _const_spec((Cin_p, Cout_p)),
                _const_spec((1, Cout_p)),
            ],
            out_specs=[
                pl.BlockSpec((1, CP, Cout_p), lambda n, c: (n, c, 0)),
                pl.BlockSpec((1, 1, 2, Cout_p), lambda n, c: (n, c, 0, 0)),
            ]),
        compiler_params=cparams,
    )(x_l, scale1, shift1, w1, cb1)

    # GroupNorm-2 scale/shift from the pass-1 partial sums (tiny, plain JAX)
    cpg2 = Cout // GROUPS
    sums = stats.sum(axis=1)                                  # (N, 2, Cout_p)
    s1 = sums[:, 0, :Cout].reshape(N, GROUPS, cpg2).sum(-1)
    s2 = sums[:, 1, :Cout].reshape(N, GROUPS, cpg2).sum(-1)
    cnt = float(HW * cpg2)
    mu2 = s1 / cnt
    # TODO(synk): E[h^2]-E[h]^2 can cancel for large-mean features; switch to a second
    #             (h-mean)^2 stats pass if that ever matters.
    var2 = jnp.maximum(s2 / cnt - mu2 * mu2, 0.0)
    inv2 = lax.rsqrt(var2 + EPS)
    scale2 = jnp.repeat(inv2, cpg2, axis=1) * gn2_w[None, :].astype(jnp.float32)
    shift2 = gn2_b[None, :].astype(jnp.float32) - jnp.repeat(mu2, cpg2, axis=1) * scale2
    scale2 = pad_last(scale2, Cout_p).reshape(N, 1, Cout_p)
    shift2 = pad_last(shift2, Cout_p).reshape(N, 1, Cout_p)

    # ---- pass 2: GN2 -> SiLU -> 3x3 conv (row-chunk + one-row halo), + 1x1-conv skip ----
    out = pl.pallas_call(
        _make_pass2_kernel(W, R),
        out_shape=jax.ShapeDtypeStruct((N, HW, Cout_p), jnp.float32),
        grid_spec=pltpu.PrefetchScalarGridSpec(
            num_scalar_prefetch=0,
            grid=(N, n_chunks),
            in_specs=[
                pl.BlockSpec((1, CP, Cout_p), lambda n, c: (n, c, 0)),
                # one-row halos above/below the chunk; index clamped at the image
                # border (the kernel zeroes them there -> the conv's zero padding)
                pl.BlockSpec((1, W, Cout_p),
                             lambda n, c: (n, jnp.maximum(c * R - 1, 0), 0)),
                pl.BlockSpec((1, W, Cout_p),
                             lambda n, c: (n, jnp.minimum(c * R + R, H - 1), 0)),
                pl.BlockSpec((1, CP, Cin_p), lambda n, c: (n, c, 0)),
                pl.BlockSpec((1, 1, Cout_p), lambda n, c: (n, 0, 0)),
                pl.BlockSpec((1, 1, Cout_p), lambda n, c: (n, 0, 0)),
                _const_spec((9, Cout_p, Cout_p)),
                _const_spec((Cin_p, Cout_p)),
                _const_spec((1, Cout_p)),
            ],
            out_specs=pl.BlockSpec((1, CP, Cout_p), lambda n, c: (n, c, 0))),
        compiler_params=cparams,
    )(h_flat, h_flat, h_flat, x_l, scale2, shift2, w2, ws, bias)

    out = out[:, :, :Cout].reshape(N, H, W, Cout)
    return jnp.transpose(out, (0, 3, 1, 2))                   # back to NCHW


def resblock_ref(x, params):
    """Plain-JAX NCHW reference (lax conv + GroupNorm, all f32) for verification."""
    gn1_w, gn1_b, c1_w, c1_b, gn2_w, gn2_b, c2_w, c2_b, cs_w, cs_b = params

    def gn(v, w, b):
        N, C, H, W = v.shape
        vg = v.reshape(N, GROUPS, C // GROUPS, H, W)
        m = vg.mean(axis=(2, 3, 4), keepdims=True)
        var = vg.var(axis=(2, 3, 4), keepdims=True)
        vn = ((vg - m) * lax.rsqrt(var + EPS)).reshape(N, C, H, W)
        return vn * w.reshape(1, C, 1, 1) + b.reshape(1, C, 1, 1)

    def conv(v, w, b, pad):
        y = lax.conv_general_dilated(v, w, (1, 1), [(pad, pad), (pad, pad)],
                                     dimension_numbers=("NCHW", "OIHW", "NCHW"))
        return y + b.reshape(1, -1, 1, 1)

    silu = lambda v: v * jax.nn.sigmoid(v)
    h = conv(silu(gn(x, gn1_w, gn1_b)), c1_w, c1_b, 0)
    h = conv(silu(gn(h, gn2_w, gn2_b)), c2_w, c2_b, 1)
    skip = conv(x, cs_w, cs_b, 0)
    return skip + h


if __name__ == "__main__":
    key = jax.random.PRNGKey(0)
    N, Cin, H, W = 2, 32, 16, 16
    Cout = 64   # out_channels != channels, use_conv=False -> 1x1-conv skip

    ks = jax.random.split(key, 8)
    x = jax.random.normal(ks[0], (N, Cin, H, W), jnp.float32)

    gn1_w = jnp.ones((Cin,), jnp.float32)
    gn1_b = jnp.zeros((Cin,), jnp.float32)
    c1_w = 0.1 * jax.random.normal(ks[1], (Cout, Cin, 1, 1), jnp.float32)
    c1_b = 0.1 * jax.random.normal(ks[2], (Cout,), jnp.float32)
    gn2_w = 1.0 + 0.1 * jax.random.normal(ks[3], (Cout,), jnp.float32)
    gn2_b = 0.1 * jax.random.normal(ks[4], (Cout,), jnp.float32)
    # NOTE: the module zero-initialises this conv (zero_module); small random weights
    # are used here so the 3x3 path is actually exercised and verified.
    c2_w = 0.05 * jax.random.normal(ks[5], (Cout, Cout, 3, 3), jnp.float32)
    c2_b = 0.05 * jax.random.normal(ks[6], (Cout,), jnp.float32)
    cs_w = 0.1 * jax.random.normal(ks[7], (Cout, Cin, 1, 1), jnp.float32)
    cs_b = jnp.zeros((Cout,), jnp.float32)

    params = (gn1_w, gn1_b, c1_w, c1_b, gn2_w, gn2_b, c2_w, c2_b, cs_w, cs_b)

    ref = jax.block_until_ready(resblock_ref(x, params))

    # forced 4-row chunks: exercises the spatial tiling / halo / stats-reduction path
    out_tiled = jax.block_until_ready(resblock_pallas(x, params, chunk_rows=4))
    assert out_tiled.shape == (N, Cout, H, W), out_tiled.shape
    err_t = float(jnp.max(jnp.abs(out_tiled - ref)))
    # bf16 MXU matmuls / bf16 activations across HBM vs all-f32 reference
    assert jnp.allclose(out_tiled, ref, atol=5e-2, rtol=5e-2), err_t

    # auto-chosen chunk size (single chunk at this toy shape): image-border edge case
    out_auto = jax.block_until_ready(resblock_pallas(x, params))
    err_a = float(jnp.max(jnp.abs(out_auto - ref)))
    assert jnp.allclose(out_auto, ref, atol=5e-2, rtol=5e-2), err_a

    print("KERNEL_OK")
</pallas_src>

<mosaic_0001>
module attributes {stable_mosaic.version = 11 : i64} {
  func.func @_pass1_kernel(%arg0: i32, %arg1: i32, %arg2: memref<1x64x128xbf16, #tpu.memory_space<vmem>>, %arg3: memref<1x1x128xf32, #tpu.memory_space<vmem>>, %arg4: memref<1x1x128xf32, #tpu.memory_space<vmem>>, %arg5: memref<128x128xbf16, #tpu.memory_space<vmem>>, %arg6: memref<1x128xf32, #tpu.memory_space<vmem>>, %arg7: memref<1x64x128xbf16, #tpu.memory_space<vmem>>, %arg8: memref<1x1x2x128xf32, #tpu.memory_space<vmem>>) attributes {dimension_semantics = [#tpu.dimension_semantics<parallel>, #tpu.dimension_semantics<parallel>], iteration_bounds = array<i64: 2, 4>, scalar_prefetch = 0 : i64, scratch_operands = 0 : i64, tpu.core_type = #tpu.core_type<tc>, window_params = [{transform_indices = @transform_0, window_bounds = array<i64: 1, 64, 128>}, {transform_indices = @transform_1, window_bounds = array<i64: 1, 1, 128>}, {transform_indices = @transform_2, window_bounds = array<i64: 1, 1, 128>}, {pipeline_mode = #tpu.pipeline_mode<synchronous>, transform_indices = @transform_3, window_bounds = array<i64: 128, 128>}, {pipeline_mode = #tpu.pipeline_mode<synchronous>, transform_indices = @transform_4, window_bounds = array<i64: 1, 128>}, {transform_indices = @transform_5, window_bounds = array<i64: 1, 64, 128>}, {transform_indices = @transform_6, window_bounds = array<i64: 1, 1, 2, 128>}]} {
    %c0 = arith.constant 0 : index
    %c0_0 = arith.constant 0 : index
    %c0_1 = arith.constant 0 : index
    %0 = vector.load %arg2[%c0, %c0_0, %c0_1] : memref<1x64x128xbf16, #tpu.memory_space<vmem>>, vector<1x64x128xbf16>
    %1 = vector.shape_cast %0 : vector<1x64x128xbf16> to vector<64x128xbf16>
    %2 = arith.extf %1 : vector<64x128xbf16> to vector<64x128xf32>
    %c0_2 = arith.constant 0 : index
    %c0_3 = arith.constant 0 : index
    %c0_4 = arith.constant 0 : index
    %3 = vector.load %arg3[%c0_2, %c0_3, %c0_4] : memref<1x1x128xf32, #tpu.memory_space<vmem>>, vector<1x1x128xf32>
    %4 = vector.shape_cast %3 : vector<1x1x128xf32> to vector<1x128xf32>
    %5 = vector.broadcast %4 : vector<1x128xf32> to vector<64x128xf32>
    %6 = arith.mulf %2, %5 : vector<64x128xf32>
    %c0_5 = arith.constant 0 : index
    %c0_6 = arith.constant 0 : index
    %c0_7 = arith.constant 0 : index
    %7 = vector.load %arg4[%c0_5, %c0_6, %c0_7] : memref<1x1x128xf32, #tpu.memory_space<vmem>>, vector<1x1x128xf32>
    %8 = vector.shape_cast %7 : vector<1x1x128xf32> to vector<1x128xf32>
    %9 = vector.broadcast %8 : vector<1x128xf32> to vector<64x128xf32>
    %10 = arith.addf %6, %9 : vector<64x128xf32>
    %11 = arith.negf %10 : vector<64x128xf32>
    %12 = math.exp %11 : vector<64x128xf32>
    %cst = arith.constant 1.000000e+00 : f32
    %13 = vector.broadcast %cst : f32 to vector<64x128xf32>
    %14 = arith.addf %13, %12 : vector<64x128xf32>
    %15 = arith.divf %13, %14 : vector<64x128xf32>
    %16 = arith.mulf %10, %15 : vector<64x128xf32>
    %17 = arith.truncf %16 : vector<64x128xf32> to vector<64x128xbf16>
    %c0_8 = arith.constant 0 : index
    %c0_9 = arith.constant 0 : index
    %18 = vector.load %arg5[%c0_8, %c0_9] : memref<128x128xbf16, #tpu.memory_space<vmem>>, vector<128x128xbf16>
    %cst_10 = arith.constant dense<0.000000e+00> : vector<64x128xf32>
    %19 = tpu.matmul %17, %18, %cst_10 {dimension_numbers = #tpu.dot_dimension_numbers<[1], [0], [0], [1], [0, 0, 1, 1], [], []>} : vector<64x128xbf16>, vector<128x128xbf16>, vector<64x128xf32> -> vector<64x128xf32>
    %c0_11 = arith.constant 0 : index
    %c0_12 = arith.constant 0 : index
    %20 = vector.load %arg6[%c0_11, %c0_12] : memref<1x128xf32, #tpu.memory_space<vmem>>, vector<1x128xf32>
    %21 = vector.broadcast %20 : vector<1x128xf32> to vector<64x128xf32>
    %22 = arith.addf %19, %21 : vector<64x128xf32>
    %23 = arith.truncf %22 : vector<64x128xf32> to vector<64x128xbf16>
    %c0_13 = arith.constant 0 : index
    %c0_14 = arith.constant 0 : index
    %c0_15 = arith.constant 0 : index
    %24 = vector.load %arg7[%c0_13, %c0_14, %c0_15] : memref<1x64x128xbf16, #tpu.memory_space<vmem>>, vector<1x64x128xbf16>
    %25 = vector.shape_cast %24 : vector<1x64x128xbf16> to vector<64x128xbf16>
    %26 = vector.shape_cast %23 : vector<64x128xbf16> to vector<1x64x128xbf16>
    tpu.vector_store %arg7[%c0_13, %c0_14, %c0_15], %26 {strides = array<i32>} : memref<1x64x128xbf16, #tpu.memory_space<vmem>>, vector<1x64x128xbf16>,
    %cst_16 = arith.constant dense<0.000000e+00> : vector<128xf32>
    %27 = vector.multi_reduction <add>, %22, %cst_16 [0] : vector<64x128xf32> to vector<128xf32>
    %28 = vector.shape_cast %27 : vector<128xf32> to vector<1x128xf32>
    %29 = arith.mulf %22, %22 : vector<64x128xf32>
    %cst_17 = arith.constant dense<0.000000e+00> : vector<128xf32>
    %30 = vector.multi_reduction <add>, %29, %cst_17 [0] : vector<64x128xf32> to vector<128xf32>
    %31 = vector.shape_cast %30 : vector<128xf32> to vector<1x128xf32>
    %32 = tpu.concatenate %28, %31 in 0 : vector<1x128xf32>, vector<1x128xf32> -> vector<2x128xf32>
    %c0_18 = arith.constant 0 : index
    %c0_19 = arith.constant 0 : index
    %c0_20 = arith.constant 0 : index
    %c0_21 = arith.constant 0 : index
    %33 = vector.load %arg8[%c0_18, %c0_19, %c0_20, %c0_21] : memref<1x1x2x128xf32, #tpu.memory_space<vmem>>, vector<1x1x2x128xf32>
    %34 = vector.shape_cast %33 : vector<1x1x2x128xf32> to vector<2x128xf32>
    %35 = vector.shape_cast %32 : vector<2x128xf32> to vector<1x1x2x128xf32>
    tpu.vector_store %arg8[%c0_18, %c0_19, %c0_20, %c0_21], %35 {strides = array<i32>} : memref<1x1x2x128xf32, #tpu.memory_space<vmem>>, vector<1x1x2x128xf32>,
    return
  }
  func.func @transform_0(%arg0: i32, %arg1: i32) -> (i32, i32, i32) {
    %c0_i32 = arith.constant 0 : i32
    %c0_i32_0 = arith.constant 0 : i32
    return %arg0, %arg1, %c0_i32 : i32, i32, i32
  }
  func.func @transform_1(%arg0: i32, %arg1: i32) -> (i32, i32, i32) {
    %c0_i32 = arith.constant 0 : i32
    %c0_i32_0 = arith.constant 0 : i32
    %c0_i32_1 = arith.constant 0 : i32
    return %arg0, %c0_i32, %c0_i32_0 : i32, i32, i32
  }
  func.func @transform_2(%arg0: i32, %arg1: i32) -> (i32, i32, i32) {
    %c0_i32 = arith.constant 0 : i32
    %c0_i32_0 = arith.constant 0 : i32
    %c0_i32_1 = arith.constant 0 : i32
    return %arg0, %c0_i32, %c0_i32_0 : i32, i32, i32
  }
  func.func @transform_3(%arg0: i32, %arg1: i32) -> (i32, i32) {
    %c0_i32 = arith.constant 0 : i32
    %c0_i32_0 = arith.constant 0 : i32
    %c0_i32_1 = arith.constant 0 : i32
    return %c0_i32, %c0_i32_0 : i32, i32
  }
  func.func @transform_4(%arg0: i32, %arg1: i32) -> (i32, i32) {
    %c0_i32 = arith.constant 0 : i32
    %c0_i32_0 = arith.constant 0 : i32
    %c0_i32_1 = arith.constant 0 : i32
    return %c0_i32, %c0_i32_0 : i32, i32
  }
  func.func @transform_5(%arg0: i32, %arg1: i32) -> (i32, i32, i32) {
    %c0_i32 = arith.constant 0 : i32
    %c0_i32_0 = arith.constant 0 : i32
    return %arg0, %arg1, %c0_i32 : i32, i32, i32
  }
  func.func @transform_6(%arg0: i32, %arg1: i32) -> (i32, i32, i32, i32) {
    %c0_i32 = arith.constant 0 : i32
    %c0_i32_0 = arith.constant 0 : i32
    %c0_i32_1 = arith.constant 0 : i32
    return %arg0, %arg1, %c0_i32, %c0_i32_0 : i32, i32, i32, i32
  }
}

module attributes {stable_mosaic.version = 11 : i64} {
  func.func @kernel(%arg0: i32, %arg1: i32, %arg2: memref<1x64x128xbf16, #tpu.memory_space<vmem>>, %arg3: memref<1x16x128xbf16, #tpu.memory_space<vmem>>, %arg4: memref<1x16x128xbf16, #tpu.memory_space<vmem>>, %arg5: memref<1x64x128xbf16, #tpu.memory_space<vmem>>, %arg6: memref<1x1x128xf32, #tpu.memory_space<vmem>>, %arg7: memref<1x1x128xf32, #tpu.memory_space<vmem>>, %arg8: memref<9x128x128xbf16, #tpu.memory_space<vmem>>, %arg9: memref<128x128xbf16, #tpu.memory_space<vmem>>, %arg10: memref<1x128xf32, #tpu.memory_space<vmem>>, %arg11: memref<1x64x128xf32, #tpu.memory_space<vmem>>) attributes {dimension_semantics = [#tpu.dimension_semantics<parallel>, #tpu.dimension_semantics<parallel>], iteration_bounds = array<i64: 2, 4>, scalar_prefetch = 0 : i64, scratch_operands = 0 : i64, tpu.core_type = #tpu.core_type<tc>, window_params = [{transform_indices = @transform_0, window_bounds = array<i64: 1, 64, 128>}, {transform_indices = @transform_1, window_bounds = array<i64: 1, 16, 128>}, {transform_indices = @transform_2, window_bounds = array<i64: 1, 16, 128>}, {transform_indices = @transform_3, window_bounds = array<i64: 1, 64, 128>}, {transform_indices = @transform_4, window_bounds = array<i64: 1, 1, 128>}, {transform_indices = @transform_5, window_bounds = array<i64: 1, 1, 128>}, {pipeline_mode = #tpu.pipeline_mode<synchronous>, transform_indices = @transform_6, window_bounds = array<i64: 9, 128, 128>}, {pipeline_mode = #tpu.pipeline_mode<synchronous>, transform_indices = @transform_7, window_bounds = array<i64: 128, 128>}, {pipeline_mode = #tpu.pipeline_mode<synchronous>, transform_indices = @transform_8, window_bounds = array<i64: 1, 128>}, {transform_indices = @transform_9, window_bounds = array<i64: 1, 64, 128>}]} {
    %c0 = arith.constant 0 : index
    %c0_0 = arith.constant 0 : index
    %c0_1 = arith.constant 0 : index
    %0 = vector.load %arg6[%c0, %c0_0, %c0_1] : memref<1x1x128xf32, #tpu.memory_space<vmem>>, vector<1x1x128xf32>
    %1 = vector.shape_cast %0 : vector<1x1x128xf32> to vector<1x128xf32>
    %c0_2 = arith.constant 0 : index
    %c0_3 = arith.constant 0 : index
    %c0_4 = arith.constant 0 : index
    %2 = vector.load %arg7[%c0_2, %c0_3, %c0_4] : memref<1x1x128xf32, #tpu.memory_space<vmem>>, vector<1x1x128xf32>
    %3 = vector.shape_cast %2 : vector<1x1x128xf32> to vector<1x128xf32>
    %c0_5 = arith.constant 0 : index
    %c0_6 = arith.constant 0 : index
    %c0_7 = arith.constant 0 : index
    %4 = vector.load %arg3[%c0_5, %c0_6, %c0_7] : memref<1x16x128xbf16, #tpu.memory_space<vmem>>, vector<1x16x128xbf16>
    %5 = vector.shape_cast %4 : vector<1x16x128xbf16> to vector<16x128xbf16>
    %6 = arith.extf %5 : vector<16x128xbf16> to vector<16x128xf32>
    %7 = vector.broadcast %1 : vector<1x128xf32> to vector<16x128xf32>
    %8 = arith.mulf %6, %7 : vector<16x128xf32>
    %9 = vector.broadcast %3 : vector<1x128xf32> to vector<16x128xf32>
    %10 = arith.addf %8, %9 : vector<16x128xf32>
    %11 = arith.negf %10 : vector<16x128xf32>
    %12 = math.exp %11 : vector<16x128xf32>
    %cst = arith.constant 1.000000e+00 : f32
    %13 = vector.broadcast %cst : f32 to vector<16x128xf32>
    %14 = arith.addf %13, %12 : vector<16x128xf32>
    %15 = arith.divf %13, %14 : vector<16x128xf32>
    %16 = arith.mulf %10, %15 : vector<16x128xf32>
    %c0_8 = arith.constant 0 : index
    %c0_9 = arith.constant 0 : index
    %c0_10 = arith.constant 0 : index
    %17 = vector.load %arg4[%c0_8, %c0_9, %c0_10] : memref<1x16x128xbf16, #tpu.memory_space<vmem>>, vector<1x16x128xbf16>
    %18 = vector.shape_cast %17 : vector<1x16x128xbf16> to vector<16x128xbf16>
    %19 = arith.extf %18 : vector<16x128xbf16> to vector<16x128xf32>
    %20 = vector.broadcast %1 : vector<1x128xf32> to vector<16x128xf32>
    %21 = arith.mulf %19, %20 : vector<16x128xf32>
    %22 = vector.broadcast %3 : vector<1x128xf32> to vector<16x128xf32>
    %23 = arith.addf %21, %22 : vector<16x128xf32>
    %24 = arith.negf %23 : vector<16x128xf32>
    %25 = math.exp %24 : vector<16x128xf32>
    %cst_11 = arith.constant 1.000000e+00 : f32
    %26 = vector.broadcast %cst_11 : f32 to vector<16x128xf32>
    %27 = arith.addf %26, %25 : vector<16x128xf32>
    %28 = arith.divf %26, %27 : vector<16x128xf32>
    %29 = arith.mulf %23, %28 : vector<16x128xf32>
    %cst_12 = arith.constant 0.000000e+00 : f32
    %30 = vector.broadcast %cst_12 : f32 to vector<16x128xf32>
    %c0_i32 = arith.constant 0 : i32
    %31 = arith.cmpi sgt, %arg1, %c0_i32 : i32
    %32 = arith.select %31, %16, %30 : vector<16x128xf32>
    %c3_i32 = arith.constant 3 : i32
    %33 = arith.cmpi slt, %arg1, %c3_i32 : i32
    %34 = arith.select %33, %29, %30 : vector<16x128xf32>
    %c0_13 = arith.constant 0 : index
    %c0_14 = arith.constant 0 : index
    %c0_15 = arith.constant 0 : index
    %35 = vector.load %arg2[%c0_13, %c0_14, %c0_15] : memref<1x64x128xbf16, #tpu.memory_space<vmem>>, vector<1x64x128xbf16>
    %36 = vector.shape_cast %35 : vector<1x64x128xbf16> to vector<64x128xbf16>
    %37 = arith.extf %36 : vector<64x128xbf16> to vector<64x128xf32>
    %38 = vector.broadcast %1 : vector<1x128xf32> to vector<64x128xf32>
    %39 = arith.mulf %37, %38 : vector<64x128xf32>
    %40 = vector.broadcast %3 : vector<1x128xf32> to vector<64x128xf32>
    %41 = arith.addf %39, %40 : vector<64x128xf32>
    %42 = arith.negf %41 : vector<64x128xf32>
    %43 = math.exp %42 : vector<64x128xf32>
    %cst_16 = arith.constant 1.000000e+00 : f32
    %44 = vector.broadcast %cst_16 : f32 to vector<64x128xf32>
    %45 = arith.addf %44, %43 : vector<64x128xf32>
    %46 = arith.divf %44, %45 : vector<64x128xf32>
    %47 = arith.mulf %41, %46 : vector<64x128xf32>
    %48 = tpu.concatenate %32, %47, %34 in 0 : vector<16x128xf32>, vector<64x128xf32>, vector<16x128xf32> -> vector<96x128xf32>
    %49 = tpu.iota {dimensions = array<i32: 0>} : vector<96x1xi32>
    %c16_i32 = arith.constant 16 : i32
    %c0_i32_17 = arith.constant 0 : i32
    %50 = arith.cmpi eq, %c16_i32, %c0_i32_17 : i32
    %c1_i32 = arith.constant 1 : i32
    %51 = arith.select %50, %c1_i32, %c16_i32 : i32
    %52 = vector.broadcast %51 : i32 to vector<96x1xi32>
    %53 = arith.remsi %49, %52 : vector<96x1xi32>
    %c0_i32_18 = arith.constant 0 : i32
    %54 = vector.broadcast %c0_i32_18 : i32 to vector<96x1xi32>
    %55 = arith.cmpi ne, %53, %54 : vector<96x1xi32>
    %c0_i32_19 = arith.constant 0 : i32
    %56 = vector.broadcast %c0_i32_19 : i32 to vector<96x1xi32>
    %57 = arith.cmpi slt, %53, %56 : vector<96x1xi32>
    %c0_i32_20 = arith.constant 0 : i32
    %58 = arith.cmpi slt, %51, %c0_i32_20 : i32
    %59 = vector.broadcast %58 : i1 to vector<96x1xi1>
    %60 = vector.broadcast %59 : vector<96x1xi1> to vector<96x1xi1>
    %61 = arith.xori %57, %60 : vector<96x1xi1>
    %62 = arith.andi %61, %55 : vector<96x1xi1>
    %63 = vector.broadcast %51 : i32 to vector<96x1xi32>
    %64 = arith.addi %53, %63 : vector<96x1xi32>
    %65 = arith.select %62, %64, %53 : vector<96x1xi1>, vector<96x1xi32>
    %66 = arith.truncf %48 : vector<96x128xf32> to vector<96x128xbf16>
    %cst_21 = arith.constant 0.000000e+00 : bf16
    %67 = vector.broadcast %cst_21 : bf16 to vector<96x128xbf16>
    %c1_i32_22 = arith.constant 1 : i32
    %68 = vector.broadcast %c1_i32_22 : i32 to vector<96x1xi32>
    %69 = arith.cmpi sge, %65, %68 : vector<96x1xi32>
    %c1_i32_23 = arith.constant 1 : i32
    %70 = tpu.dynamic_rotate %48 by %c1_i32_23 dim 0 : vector<96x128xf32>, i32 -> vector<96x128xf32>
    %71 = arith.truncf %70 : vector<96x128xf32> to vector<96x128xbf16>
    %72 = vector.shape_cast %69 : vector<96x1xi1> to vector<96x1xi1>
    %73 = vector.broadcast %72 : vector<96x1xi1> to vector<96x128xi1>
    %74 = arith.select %73, %71, %67 : vector<96x128xi1>, vector<96x128xbf16>
    %c14_i32 = arith.constant 14 : i32
    %75 = vector.broadcast %c14_i32 : i32 to vector<96x1xi32>
    %76 = arith.cmpi sle, %65, %75 : vector<96x1xi32>
    %c95_i32 = arith.constant 95 : i32
    %77 = tpu.dynamic_rotate %48 by %c95_i32 dim 0 : vector<96x128xf32>, i32 -> vector<96x128xf32>
    %78 = arith.truncf %77 : vector<96x128xf32> to vector<96x128xbf16>
    %79 = vector.shape_cast %76 : vector<96x1xi1> to vector<96x1xi1>
    %80 = vector.broadcast %79 : vector<96x1xi1> to vector<96x128xi1>
    %81 = arith.select %80, %78, %67 : vector<96x128xi1>, vector<96x128xbf16>
    %c0_24 = arith.constant 0 : index
    %c0_25 = arith.constant 0 : index
    %c0_26 = arith.constant 0 : index
    %82 = vector.load %arg5[%c0_24, %c0_25, %c0_26] : memref<1x64x128xbf16, #tpu.memory_space<vmem>>, vector<1x64x128xbf16>
    %83 = vector.shape_cast %82 : vector<1x64x128xbf16> to vector<64x128xbf16>
    %c0_27 = arith.constant 0 : index
    %c0_28 = arith.constant 0 : index
    %84 = vector.load %arg9[%c0_27, %c0_28] : memref<128x128xbf16, #tpu.memory_space<vmem>>, vector<128x128xbf16>
    %cst_29 = arith.constant dense<0.000000e+00> : vector<64x128xf32>
    %85 = tpu.matmul %83, %84, %cst_29 {dimension_numbers = #tpu.dot_dimension_numbers<[1], [0], [0], [1], [0, 0, 1, 1], [], []>} : vector<64x128xbf16>, vector<128x128xbf16>, vector<64x128xf32> -> vector<64x128xf32>
    %86 = vector.extract_strided_slice %74 {offsets = [0, 0], sizes = [64, 128], strides = [1, 1]} : vector<96x128xbf16> to vector<64x128xbf16>
    %c0_30 = arith.constant 0 : index
    %c0_31 = arith.constant 0 : index
    %c0_32 = arith.constant 0 : index
    %87 = vector.load %arg8[%c0_30, %c0_31, %c0_32] : memref<9x128x128xbf16, #tpu.memory_space<vmem>>, vector<1x128x128xbf16>
    %88 = vector.shape_cast %87 : vector<1x128x128xbf16> to vector<128x128xbf16>
    %cst_33 = arith.constant dense<0.000000e+00> : vector<64x128xf32>
    %89 = tpu.matmul %86, %88, %cst_33 {dimension_numbers = #tpu.dot_dimension_numbers<[1], [0], [0], [1], [0, 0, 1, 1], [], []>} : vector<64x128xbf16>, vector<128x128xbf16>, vector<64x128xf32> -> vector<64x128xf32>
    %90 = arith.addf %85, %89 : vector<64x128xf32>
    %91 = vector.extract_strided_slice %66 {offsets = [0, 0], sizes = [64, 128], strides = [1, 1]} : vector<96x128xbf16> to vector<64x128xbf16>
    %c1 = arith.constant 1 : index
    %c0_34 = arith.constant 0 : index
    %c0_35 = arith.constant 0 : index
    %92 = vector.load %arg8[%c1, %c0_34, %c0_35] : memref<9x128x128xbf16, #tpu.memory_space<vmem>>, vector<1x128x128xbf16>
    %93 = vector.shape_cast %92 : vector<1x128x128xbf16> to vector<128x128xbf16>
    %cst_36 = arith.constant dense<0.000000e+00> : vector<64x128xf32>
    %94 = tpu.matmul %91, %93, %cst_36 {dimension_numbers = #tpu.dot_dimension_numbers<[1], [0], [0], [1], [0, 0, 1, 1], [], []>} : vector<64x128xbf16>, vector<128x128xbf16>, vector<64x128xf32> -> vector<64x128xf32>
    %95 = arith.addf %90, %94 : vector<64x128xf32>
    %96 = vector.extract_strided_slice %81 {offsets = [0, 0], sizes = [64, 128], strides = [1, 1]} : vector<96x128xbf16> to vector<64x128xbf16>
    %c2 = arith.constant 2 : index
    %c0_37 = arith.constant 0 : index
    %c0_38 = arith.constant 0 : index
    %97 = vector.load %arg8[%c2, %c0_37, %c0_38] : memref<9x128x128xbf16, #tpu.memory_space<vmem>>, vector<1x128x128xbf16>
    %98 = vector.shape_cast %97 : vector<1x128x128xbf16> to vector<128x128xbf16>
    %cst_39 = arith.constant dense<0.000000e+00> : vector<64x128xf32>
    %99 = tpu.matmul %96, %98, %cst_39 {dimension_numbers = #tpu.dot_dimension_numbers<[1], [0], [0], [1], [0, 0, 1, 1], [], []>} : vector<64x128xbf16>, vector<128x128xbf16>, vector<64x128xf32> -> vector<64x128xf32>
    %100 = arith.addf %95, %99 : vector<64x128xf32>
    %101 = vector.extract_strided_slice %74 {offsets = [16, 0], sizes = [64, 128], strides = [1, 1]} : vector<96x128xbf16> to vector<64x128xbf16>
    %c3 = arith.constant 3 : index
    %c0_40 = arith.constant 0 : index
    %c0_41 = arith.constant 0 : index
    %102 = vector.load %arg8[%c3, %c0_40, %c0_41] : memref<9x128x128xbf16, #tpu.memory_space<vmem>>, vector<1x128x128xbf16>
    %103 = vector.shape_cast %102 : vector<1x128x128xbf16> to vector<128x128xbf16>
    %cst_42 = arith.constant dense<0.000000e+00> : vector<64x128xf32>
    %104 = tpu.matmul %101, %103, %cst_42 {dimension_numbers = #tpu.dot_dimension_numbers<[1], [0], [0], [1], [0, 0, 1, 1], [], []>} : vector<64x128xbf16>, vector<128x128xbf16>, vector<64x128xf32> -> vector<64x128xf32>
    %105 = arith.addf %100, %104 : vector<64x128xf32>
    %106 = vector.extract_strided_slice %66 {offsets = [16, 0], sizes = [64, 128], strides = [1, 1]} : vector<96x128xbf16> to vector<64x128xbf16>
    %c4 = arith.constant 4 : index
    %c0_43 = arith.constant 0 : index
    %c0_44 = arith.constant 0 : index
    %107 = vector.load %arg8[%c4, %c0_43, %c0_44] : memref<9x128x128xbf16, #tpu.memory_space<vmem>>, vector<1x128x128xbf16>
    %108 = vector.shape_cast %107 : vector<1x128x128xbf16> to vector<128x128xbf16>
    %cst_45 = arith.constant dense<0.000000e+00> : vector<64x128xf32>
    %109 = tpu.matmul %106, %108, %cst_45 {dimension_numbers = #tpu.dot_dimension_numbers<[1], [0], [0], [1], [0, 0, 1, 1], [], []>} : vector<64x128xbf16>, vector<128x128xbf16>, vector<64x128xf32> -> vector<64x128xf32>
    %110 = arith.addf %105, %109 : vector<64x128xf32>
    %111 = vector.extract_strided_slice %81 {offsets = [16, 0], sizes = [64, 128], strides = [1, 1]} : vector<96x128xbf16> to vector<64x128xbf16>
    %c5 = arith.constant 5 : index
    %c0_46 = arith.constant 0 : index
    %c0_47 = arith.constant 0 : index
    %112 = vector.load %arg8[%c5, %c0_46, %c0_47] : memref<9x128x128xbf16, #tpu.memory_space<vmem>>, vector<1x128x128xbf16>
    %113 = vector.shape_cast %112 : vector<1x128x128xbf16> to vector<128x128xbf16>
    %cst_48 = arith.constant dense<0.000000e+00> : vector<64x128xf32>
    %114 = tpu.matmul %111, %113, %cst_48 {dimension_numbers = #tpu.dot_dimension_numbers<[1], [0], [0], [1], [0, 0, 1, 1], [], []>} : vector<64x128xbf16>, vector<128x128xbf16>, vector<64x128xf32> -> vector<64x128xf32>
    %115 = arith.addf %110, %114 : vector<64x128xf32>
    %116 = vector.extract_strided_slice %74 {offsets = [32, 0], sizes = [64, 128], strides = [1, 1]} : vector<96x128xbf16> to vector<64x128xbf16>
    %c6 = arith.constant 6 : index
    %c0_49 = arith.constant 0 : index
    %c0_50 = arith.constant 0 : index
    %117 = vector.load %arg8[%c6, %c0_49, %c0_50] : memref<9x128x128xbf16, #tpu.memory_space<vmem>>, vector<1x128x128xbf16>
    %118 = vector.shape_cast %117 : vector<1x128x128xbf16> to vector<128x128xbf16>
    %cst_51 = arith.constant dense<0.000000e+00> : vector<64x128xf32>
    %119 = tpu.matmul %116, %118, %cst_51 {dimension_numbers = #tpu.dot_dimension_numbers<[1], [0], [0], [1], [0, 0, 1, 1], [], []>} : vector<64x128xbf16>, vector<128x128xbf16>, vector<64x128xf32> -> vector<64x128xf32>
    %120 = arith.addf %115, %119 : vector<64x128xf32>
    %121 = vector.extract_strided_slice %66 {offsets = [32, 0], sizes = [64, 128], strides = [1, 1]} : vector<96x128xbf16> to vector<64x128xbf16>
    %c7 = arith.constant 7 : index
    %c0_52 = arith.constant 0 : index
    %c0_53 = arith.constant 0 : index
    %122 = vector.load %arg8[%c7, %c0_52, %c0_53] : memref<9x128x128xbf16, #tpu.memory_space<vmem>>, vector<1x128x128xbf16>
    %123 = vector.shape_cast %122 : vector<1x128x128xbf16> to vector<128x128xbf16>
    %cst_54 = arith.constant dense<0.000000e+00> : vector<64x128xf32>
    %124 = tpu.matmul %121, %123, %cst_54 {dimension_numbers = #tpu.dot_dimension_numbers<[1], [0], [0], [1], [0, 0, 1, 1], [], []>} : vector<64x128xbf16>, vector<128x128xbf16>, vector<64x128xf32> -> vector<64x128xf32>
    %125 = arith.addf %120, %124 : vector<64x128xf32>
    %126 = vector.extract_strided_slice %81 {offsets = [32, 0], sizes = [64, 128], strides = [1, 1]} : vector<96x128xbf16> to vector<64x128xbf16>
    %c8 = arith.constant 8 : index
    %c0_55 = arith.constant 0 : index
    %c0_56 = arith.constant 0 : index
    %127 = vector.load %arg8[%c8, %c0_55, %c0_56] : memref<9x128x128xbf16, #tpu.memory_space<vmem>>, vector<1x128x128xbf16>
    %128 = vector.shape_cast %127 : vector<1x128x128xbf16> to vector<128x128xbf16>
    %cst_57 = arith.constant dense<0.000000e+00> : vector<64x128xf32>
    %129 = tpu.matmul %126, %128, %cst_57 {dimension_numbers = #tpu.dot_dimension_numbers<[1], [0], [0], [1], [0, 0, 1, 1], [], []>} : vector<64x128xbf16>, vector<128x128xbf16>, vector<64x128xf32> -> vector<64x128xf32>
    %130 = arith.addf %125, %129 : vector<64x128xf32>
    %c0_58 = arith.constant 0 : index
    %c0_59 = arith.constant 0 : index
    %131 = vector.load %arg10[%c0_58, %c0_59] : memref<1x128xf32, #tpu.memory_space<vmem>>, vector<1x128xf32>
    %132 = vector.broadcast %131 : vector<1x128xf32> to vector<64x128xf32>
    %133 = arith.addf %130, %132 : vector<64x128xf32>
    %c0_60 = arith.constant 0 : index
    %c0_61 = arith.constant 0 : index
    %c0_62 = arith.constant 0 : index
    %134 = vector.load %arg11[%c0_60, %c0_61, %c0_62] : memref<1x64x128xf32, #tpu.memory_space<vmem>>, vector<1x64x128xf32>
    %135 = vector.shape_cast %134 : vector<1x64x128xf32> to vector<64x128xf32>
    %136 = vector.shape_cast %133 : vector<64x128xf32> to vector<1x64x128xf32>
    tpu.vector_store %arg11[%c0_60, %c0_61, %c0_62], %136 {strides = array<i32>} : memref<1x64x128xf32, #tpu.memory_space<vmem>>, vector<1x64x128xf32>,
    return
  }
  func.func @transform_0(%arg0: i32, %arg1: i32) -> (i32, i32, i32) {
    %c0_i32 = arith.constant 0 : i32
    %c0_i32_0 = arith.constant 0 : i32
    return %arg0, %arg1, %c0_i32 : i32, i32, i32
  }
  func.func @transform_1(%arg0: i32, %arg1: i32) -> (i32, i32, i32) {
    %c4_i32 = arith.constant 4 : i32
    %0 = arith.muli %arg1, %c4_i32 : i32
    %c1_i32 = arith.constant 1 : i32
    %1 = arith.subi %0, %c1_i32 : i32
    %c0_i32 = arith.constant 0 : i32
    %2 = arith.maxsi %1, %c0_i32 : i32
    %c0_i32_0 = arith.constant 0 : i32
    %c0_i32_1 = arith.constant 0 : i32
    return %arg0, %2, %c0_i32_0 : i32, i32, i32
  }
  func.func @transform_2(%arg0: i32, %arg1: i32) -> (i32, i32, i32) {
    %c4_i32 = arith.constant 4 : i32
    %0 = arith.muli %arg1, %c4_i32 : i32
    %c4_i32_0 = arith.constant 4 : i32
    %1 = arith.addi %0, %c4_i32_0 : i32
    %c15_i32 = arith.constant 15 : i32
    %2 = arith.minsi %1, %c15_i32 : i32
    %c0_i32 = arith.constant 0 : i32
    %c0_i32_1 = arith.constant 0 : i32
    return %arg0, %2, %c0_i32 : i32, i32, i32
  }
  func.func @transform_3(%arg0: i32, %arg1: i32) -> (i32, i32, i32) {
    %c0_i32 = arith.constant 0 : i32
    %c0_i32_0 = arith.constant 0 : i32
    return %arg0, %arg1, %c0_i32 : i32, i32, i32
  }
  func.func @transform_4(%arg0: i32, %arg1: i32) -> (i32, i32, i32) {
    %c0_i32 = arith.constant 0 : i32
    %c0_i32_0 = arith.constant 0 : i32
    %c0_i32_1 = arith.constant 0 : i32
    return %arg0, %c0_i32, %c0_i32_0 : i32, i32, i32
  }
  func.func @transform_5(%arg0: i32, %arg1: i32) -> (i32, i32, i32) {
    %c0_i32 = arith.constant 0 : i32
    %c0_i32_0 = arith.constant 0 : i32
    %c0_i32_1 = arith.constant 0 : i32
    return %arg0, %c0_i32, %c0_i32_0 : i32, i32, i32
  }
  func.func @transform_6(%arg0: i32, %arg1: i32) -> (i32, i32, i32) {
    %c0_i32 = arith.constant 0 : i32
    %c0_i32_0 = arith.constant 0 : i32
    %c0_i32_1 = arith.constant 0 : i32
    %c0_i32_2 = arith.constant 0 : i32
    return %c0_i32, %c0_i32_0, %c0_i32_1 : i32, i32, i32
  }
  func.func @transform_7(%arg0: i32, %arg1: i32) -> (i32, i32) {
    %c0_i32 = arith.constant 0 : i32
    %c0_i32_0 = arith.constant 0 : i32
    %c0_i32_1 = arith.constant 0 : i32
    return %c0_i32, %c0_i32_0 : i32, i32
  }
  func.func @transform_8(%arg0: i32, %arg1: i32) -> (i32, i32) {
    %c0_i32 = arith.constant 0 : i32
    %c0_i32_0 = arith.constant 0 : i32
    %c0_i32_1 = arith.constant 0 : i32
    return %c0_i32, %c0_i32_0 : i32, i32
  }
  func.func @transform_9(%arg0: i32, %arg1: i32) -> (i32, i32, i32) {
    %c0_i32 = arith.constant 0 : i32
    %c0_i32_0 = arith.constant 0 : i32
    return %arg0, %arg1, %c0_i32 : i32, i32, i32
  }
}

</mosaic_0001>

<bundles_post_ra>
// kernel: squeeze.6
= control target key start
LH: loop header
LB: loop body
LE: loop exit
PB: predicated region body
PF: predicated region fallthrough
CT: control target
= control target key end

     0   :  { %s354_s8 = smov 122   ;;  %s355_s9 = smov 124   ;;  %vm7_vm0 = vcmask 15360   ;;  %s653_s0 = inlined_call_operand.vmem [shape: f32[2,64], index: 0, kind: input, shape index: {}]   ;;  %s654_s1 = inlined_call_operand.vmem [shape: f32[2,32,2], index: 1, kind: output, shape index: {}]  }
   0x1   :  { %v4_v0 = vld [vmem:[%s653_s0] sm:$0x3]  ;;  %s353_s0 = smov 126   ;;  %s356_s10 = smov 120  }
   0x2   :  { %5 = vst [vmem:[#allocation0] sm:$0x3] %v4_v0  ;;  %s357_s11 = smov 118   ;;  %s358_s12 = smov 116  }
   0x3   :  { %s359_s13 = smov 114   ;;  %s360_s14 = smov 112  }
   0x4   :  { %s361_s15 = smov 110   ;;  %s362_s16 = smov 108  }
   0x5   :  { %s363_s17 = smov 106   ;;  %s364_s18 = smov 104  }
   0x6   :  { %s365_s19 = smov 102   ;;  %s366_s20 = smov 100  }
   0x7   :  { %s367_s21 = smov 98   ;;  %s368_s22 = smov 96  }
   0x8   :  { %s369_s23 = smov 94   ;;  %s370_s24 = smov 92  }
   0x9   :  { %v11_v1 = vld [vmem:[#allocation0] sm:$0x3]   ;;  %s371_s25 = smov 90   ;;  %s372_s26 = smov 88  }
   0xa   :  { %v27_v2 = vld [vmem:[#allocation0] sm:$0x3]   ;;  %12 = vrot.lane.b32.xlu0 %v11_v1, %s353_s0  ;;  %s373_s27 = smov 86   ;;  %s374_s28 = smov 84  }
   0xb   :  { %28 = vrot.lane.b32.xlu1 %v27_v2, %s354_s8  ;;  %v19_v3 = vld [vmem:[#allocation0] sm:$0x3]   ;;  %s375_s29 = smov 82   ;;  %s376_s30 = smov 80  }
   0xc   :  { %v35_v4 = vld [vmem:[#allocation0] sm:$0x3]   ;;  %s377_s6 = smov 78   ;;  %s378_s7 = smov 76  }
   0xd   :  { %v43_v5 = vld [vmem:[#allocation0] sm:$0x3]   ;;  %s379_s0 = smov 74   ;;  %s380_s8 = smov 72  }
   0xe   :  { %20 = vrot.lane.b32.xlu0 %v19_v3, %s355_s9  ;;  %v51_v6 = vld [vmem:[#allocation0] sm:$0x3]   ;;  %s381_s9 = smov 70  }
   0xf   :  { %36 = vrot.lane.b32.xlu1 %v35_v4, %s356_s10  ;;  %v59_v7 = vld [vmem:[#allocation0] sm:$0x3]   ;;  %s382_s10 = smov 68  }
  0x10   :  { %v67_v8 = vld [vmem:[#allocation0] sm:$0x3]  }
  0x11   :  { %v75_v9 = vld [vmem:[#allocation0] sm:$0x3]  }
  0x12   :  { %44 = vrot.lane.b32.xlu0 %v43_v5, %s357_s11  ;;  %v83_v10 = vld [vmem:[#allocation0] sm:$0x3]   ;;  %s383_s11 = smov 66  }
  0x13   :  { %52 = vrot.lane.b32.xlu1 %v51_v6, %s358_s12  ;;  %v91_v11 = vld [vmem:[#allocation0] sm:$0x3]  }
  0x14   :  { %v99_v12 = vld [vmem:[#allocation0] sm:$0x3]  }
  0x15   :  { %v107_v13 = vld [vmem:[#allocation0] sm:$0x3]  }
  0x16   :  { %60 = vrot.lane.b32.xlu0 %v59_v7, %s359_s13  ;;  %v115_v14 = vld [vmem:[#allocation0] sm:$0x3]  }
  0x17   :  { %68 = vrot.lane.b32.xlu1 %v67_v8, %s360_s14  ;;  %v123_v15 = vld [vmem:[#allocation0] sm:$0x3]  }
  0x18   :  { %v131_v16 = vld [vmem:[#allocation0] sm:$0x3]  }
  0x19   :  { %v139_v17 = vld [vmem:[#allocation0] sm:$0x3]  }
  0x1a   :  { %76 = vrot.lane.b32.xlu0 %v75_v9, %s361_s15  ;;  %v147_v18 = vld [vmem:[#allocation0] sm:$0x3]  }
  0x1b   :  { %84 = vrot.lane.b32.xlu1 %v83_v10, %s362_s16  ;;  %v155_v19 = vld [vmem:[#allocation0] sm:$0x3]  }
  0x1c   :  { %v163_v20 = vld [vmem:[#allocation0] sm:$0x3]  }
  0x1d   :  { %v171_v21 = vld [vmem:[#allocation0] sm:$0x3]  }
  0x1e   :  { %92 = vrot.lane.b32.xlu0 %v91_v11, %s363_s17  ;;  %v179_v22 = vld [vmem:[#allocation0] sm:$0x3]  }
  0x1f   :  { %100 = vrot.lane.b32.xlu1 %v99_v12, %s364_s18  ;;  %v187_v23 = vld [vmem:[#allocation0] sm:$0x3]  }
  0x20   :  { %v195_v24 = vld [vmem:[#allocation0] sm:$0x3]  }
  0x21   :  { %v203_v25 = vld [vmem:[#allocation0] sm:$0x3]  }
  0x22   :  { %108 = vrot.lane.b32.xlu0 %v107_v13, %s365_s19  ;;  %v211_v26 = vld [vmem:[#allocation0] sm:$0x3]  }
  0x23   :  { %116 = vrot.lane.b32.xlu1 %v115_v14, %s366_s20  ;;  %v6_v27 = vld [vmem:[#allocation0] sm:$0x3]  }
  0x24   :  { %8 = vst.msk [vmem:[%s654_s1] sm:$0x1] %vm7_vm0, %v6_v27   ;;  %259 = vst.msk [vmem:[%s654_s1 + $0x1f] sm:$0x2] %vm7_vm0, %v6_v27   ;;  %v219_v28 = vld [vmem:[#allocation0] sm:$0x3]  }
  0x25   :  { %v227_v29 = vld [vmem:[#allocation0] sm:$0x3]  }
  0x26   :  { %124 = vrot.lane.b32.xlu0 %v123_v15, %s367_s21  ;;  %v235_v30 = vld [vmem:[#allocation0] sm:$0x3]  }
  0x27   :  { %132 = vrot.lane.b32.xlu1 %v131_v16, %s368_s22  ;;  %v243_v31 = vld [vmem:[#allocation0] sm:$0x3]  }
  0x28   :  { %v251_v32 = vld [vmem:[#allocation0] sm:$0x3]  }
  0x2a   :  { %140 = vrot.lane.b32.xlu0 %v139_v17, %s369_s23 }
  0x2b   :  { %148 = vrot.lane.b32.xlu1 %v147_v18, %s370_s24 }
  0x2e   :  { %156 = vrot.lane.b32.xlu0 %v155_v19, %s371_s25 }
  0x2f   :  { %164 = vrot.lane.b32.xlu1 %v163_v20, %s372_s26 }
  0x32   :  { %172 = vrot.lane.b32.xlu0 %v171_v21, %s373_s27 }
  0x33   :  { %180 = vrot.lane.b32.xlu1 %v179_v22, %s374_s28 }
  0x36   :  { %188 = vrot.lane.b32.xlu0 %v187_v23, %s375_s29 }
  0x37   :  { %196 = vrot.lane.b32.xlu1 %v195_v24, %s376_s30 }
  0x3a   :  { %204 = vrot.lane.b32.xlu0 %v203_v25, %s377_s6 }
  0x3b   :  { %212 = vrot.lane.b32.xlu1 %v211_v26, %s378_s7 }
  0x3e   :  { %220 = vrot.lane.b32.xlu0 %v219_v28, %s379_s0 }
  0x3f   :  { %228 = vrot.lane.b32.xlu1 %v227_v29, %s380_s8 }
  0x42   :  { %236 = vrot.lane.b32.xlu0 %v235_v30, %s381_s9 }
  0x43   :  { %244 = vrot.lane.b32.xlu1 %v243_v31, %s382_s10 }
  0x46   :  { %252 = vrot.lane.b32.xlu0 %v251_v32, %s383_s11 }
  0x7c   :  { %v13_v33 = vpop.permute.xlu0 %12  }
  0x7d   :  { %v29_v34 = vpop.permute.xlu1 %28   ;;  %260 = vst.msk [vmem:[%s654_s1 + $0x1] sm:$0x1] %vm7_vm0, %v13_v33   ;;  %261 = vst.msk [vmem:[%s654_s1 + $0x20] sm:$0x2] %vm7_vm0, %v13_v33  }
  0x7e   :  { %264 = vst.msk [vmem:[%s654_s1 + $0x3] sm:$0x1] %vm7_vm0, %v29_v34   ;;  %265 = vst.msk [vmem:[%s654_s1 + $0x22] sm:$0x2] %vm7_vm0, %v29_v34  }
  0x80   :  { %v21_v35 = vpop.permute.xlu0 %20  }
  0x81   :  { %v37_v36 = vpop.permute.xlu1 %36   ;;  %262 = vst.msk [vmem:[%s654_s1 + $0x2] sm:$0x1] %vm7_vm0, %v21_v35   ;;  %263 = vst.msk [vmem:[%s654_s1 + $0x21] sm:$0x2] %vm7_vm0, %v21_v35  }
  0x82   :  { %266 = vst.msk [vmem:[%s654_s1 + $0x4] sm:$0x1] %vm7_vm0, %v37_v36   ;;  %267 = vst.msk [vmem:[%s654_s1 + $0x23] sm:$0x2] %vm7_vm0, %v37_v36  }
  0x84   :  { %v45_v37 = vpop.permute.xlu0 %44  }
  0x85   :  { %v53_v38 = vpop.permute.xlu1 %52   ;;  %268 = vst.msk [vmem:[%s654_s1 + $0x5] sm:$0x1] %vm7_vm0, %v45_v37   ;;  %269 = vst.msk [vmem:[%s654_s1 + $0x24] sm:$0x2] %vm7_vm0, %v45_v37  }
  0x86   :  { %270 = vst.msk [vmem:[%s654_s1 + $0x6] sm:$0x1] %vm7_vm0, %v53_v38   ;;  %271 = vst.msk [vmem:[%s654_s1 + $0x25] sm:$0x2] %vm7_vm0, %v53_v38  }
  0x88   :  { %v61_v39 = vpop.permute.xlu0 %60  }
  0x89   :  { %v69_v40 = vpop.permute.xlu1 %68   ;;  %272 = vst.msk [vmem:[%s654_s1 + $0x7] sm:$0x1] %vm7_vm0, %v61_v39   ;;  %273 = vst.msk [vmem:[%s654_s1 + $0x26] sm:$0x2] %vm7_vm0, %v61_v39  }
  0x8a   :  { %274 = vst.msk [vmem:[%s654_s1 + $0x8] sm:$0x1] %vm7_vm0, %v69_v40   ;;  %275 = vst.msk [vmem:[%s654_s1 + $0x27] sm:$0x2] %vm7_vm0, %v69_v40  }
  0x8c   :  { %v77_v41 = vpop.permute.xlu0 %76  }
  0x8d   :  { %v85_v42 = vpop.permute.xlu1 %84   ;;  %276 = vst.msk [vmem:[%s654_s1 + $0x9] sm:$0x1] %vm7_vm0, %v77_v41   ;;  %277 = vst.msk [vmem:[%s654_s1 + $0x28] sm:$0x2] %vm7_vm0, %v77_v41  }
  0x8e   :  { %278 = vst.msk [vmem:[%s654_s1 + $0xa] sm:$0x1] %vm7_vm0, %v85_v42   ;;  %279 = vst.msk [vmem:[%s654_s1 + $0x29] sm:$0x2] %vm7_vm0, %v85_v42  }
  0x90   :  { %v93_v43 = vpop.permute.xlu0 %92  }
  0x91   :  { %v101_v44 = vpop.permute.xlu1 %100   ;;  %280 = vst.msk [vmem:[%s654_s1 + $0xb] sm:$0x1] %vm7_vm0, %v93_v43   ;;  %281 = vst.msk [vmem:[%s654_s1 + $0x2a] sm:$0x2] %vm7_vm0, %v93_v43  }
  0x92   :  { %282 = vst.msk [vmem:[%s654_s1 + $0xc] sm:$0x1] %vm7_vm0, %v101_v44   ;;  %283 = vst.msk [vmem:[%s654_s1 + $0x2b] sm:$0x2] %vm7_vm0, %v101_v44  }
  0x94   :  { %v109_v45 = vpop.permute.xlu0 %108  }
  0x95   :  { %v117_v46 = vpop.permute.xlu1 %116   ;;  %284 = vst.msk [vmem:[%s654_s1 + $0xd] sm:$0x1] %vm7_vm0, %v109_v45   ;;  %285 = vst.msk [vmem:[%s654_s1 + $0x2c] sm:$0x2] %vm7_vm0, %v109_v45  }
  0x96   :  { %286 = vst.msk [vmem:[%s654_s1 + $0xe] sm:$0x1] %vm7_vm0, %v117_v46   ;;  %287 = vst.msk [vmem:[%s654_s1 + $0x2d] sm:$0x2] %vm7_vm0, %v117_v46  }
  0x98   :  { %v125_v47 = vpop.permute.xlu0 %124  }
  0x99   :  { %v133_v48 = vpop.permute.xlu1 %132   ;;  %288 = vst.msk [vmem:[%s654_s1 + $0xf] sm:$0x1] %vm7_vm0, %v125_v47   ;;  %289 = vst.msk [vmem:[%s654_s1 + $0x2e] sm:$0x2] %vm7_vm0, %v125_v47  }
  0x9a   :  { %290 = vst.msk [vmem:[%s654_s1 + $0x10] sm:$0x1] %vm7_vm0, %v133_v48   ;;  %291 = vst.msk [vmem:[%s654_s1 + $0x2f] sm:$0x2] %vm7_vm0, %v133_v48  }
  0x9c   :  { %v141_v49 = vpop.permute.xlu0 %140  }
  0x9d   :  { %v149_v50 = vpop.permute.xlu1 %148   ;;  %292 = vst.msk [vmem:[%s654_s1 + $0x11] sm:$0x1] %vm7_vm0, %v141_v49   ;;  %293 = vst.msk [vmem:[%s654_s1 + $0x30] sm:$0x2] %vm7_vm0, %v141_v49  }
  0x9e   :  { %294 = vst.msk [vmem:[%s654_s1 + $0x12] sm:$0x1] %vm7_vm0, %v149_v50   ;;  %295 = vst.msk [vmem:[%s654_s1 + $0x31] sm:$0x2] %vm7_vm0, %v149_v50  }
  0xa0   :  { %v157_v51 = vpop.permute.xlu0 %156  }
  0xa1   :  { %v165_v52 = vpop.permute.xlu1 %164   ;;  %296 = vst.msk [vmem:[%s654_s1 + $0x13] sm:$0x1] %vm7_vm0, %v157_v51   ;;  %297 = vst.msk [vmem:[%s654_s1 + $0x32] sm:$0x2] %vm7_vm0, %v157_v51  }
  0xa2   :  { %298 = vst.msk [vmem:[%s654_s1 + $0x14] sm:$0x1] %vm7_vm0, %v165_v52   ;;  %299 = vst.msk [vmem:[%s654_s1 + $0x33] sm:$0x2] %vm7_vm0, %v165_v52  }
  0xa4   :  { %v173_v53 = vpop.permute.xlu0 %172  }
  0xa5   :  { %v181_v54 = vpop.permute.xlu1 %180   ;;  %300 = vst.msk [vmem:[%s654_s1 + $0x15] sm:$0x1] %vm7_vm0, %v173_v53   ;;  %301 = vst.msk [vmem:[%s654_s1 + $0x34] sm:$0x2] %vm7_vm0, %v173_v53  }
  0xa6   :  { %302 = vst.msk [vmem:[%s654_s1 + $0x16] sm:$0x1] %vm7_vm0, %v181_v54   ;;  %303 = vst.msk [vmem:[%s654_s1 + $0x35] sm:$0x2] %vm7_vm0, %v181_v54  }
  0xa8   :  { %v189_v55 = vpop.permute.xlu0 %188  }
  0xa9   :  { %v197_v56 = vpop.permute.xlu1 %196   ;;  %304 = vst.msk [vmem:[%s654_s1 + $0x17] sm:$0x1] %vm7_vm0, %v189_v55   ;;  %305 = vst.msk [vmem:[%s654_s1 + $0x36] sm:$0x2] %vm7_vm0, %v189_v55  }
  0xaa   :  { %306 = vst.msk [vmem:[%s654_s1 + $0x18] sm:$0x1] %vm7_vm0, %v197_v56   ;;  %307 = vst.msk [vmem:[%s654_s1 + $0x37] sm:$0x2] %vm7_vm0, %v197_v56  }
  0xac   :  { %v205_v57 = vpop.permute.xlu0 %204  }
  0xad   :  { %v213_v58 = vpop.permute.xlu1 %212   ;;  %308 = vst.msk [vmem:[%s654_s1 + $0x19] sm:$0x1] %vm7_vm0, %v205_v57   ;;  %309 = vst.msk [vmem:[%s654_s1 + $0x38] sm:$0x2] %vm7_vm0, %v205_v57  }
  0xae   :  { %310 = vst.msk [vmem:[%s654_s1 + $0x1a] sm:$0x1] %vm7_vm0, %v213_v58   ;;  %311 = vst.msk [vmem:[%s654_s1 + $0x39] sm:$0x2] %vm7_vm0, %v213_v58  }
  0xb0   :  { %v221_v59 = vpop.permute.xlu0 %220  }
  0xb1   :  { %v229_v60 = vpop.permute.xlu1 %228   ;;  %312 = vst.msk [vmem:[%s654_s1 + $0x1b] sm:$0x1] %vm7_vm0, %v221_v59   ;;  %313 = vst.msk [vmem:[%s654_s1 + $0x3a] sm:$0x2] %vm7_vm0, %v221_v59  }
  0xb2   :  { %314 = vst.msk [vmem:[%s654_s1 + $0x1c] sm:$0x1] %vm7_vm0, %v229_v60   ;;  %315 = vst.msk [vmem:[%s654_s1 + $0x3b] sm:$0x2] %vm7_vm0, %v229_v60  }
  0xb4   :  { %v237_v61 = vpop.permute.xlu0 %236  }
  0xb5   :  { %v245_v62 = vpop.permute.xlu1 %244   ;;  %316 = vst.msk [vmem:[%s654_s1 + $0x1d] sm:$0x1] %vm7_vm0, %v237_v61   ;;  %317 = vst.msk [vmem:[%s654_s1 + $0x3c] sm:$0x2] %vm7_vm0, %v237_v61  }
  0xb6   :  { %318 = vst.msk [vmem:[%s654_s1 + $0x1e] sm:$0x1] %vm7_vm0, %v245_v62   ;;  %319 = vst.msk [vmem:[%s654_s1 + $0x3d] sm:$0x2] %vm7_vm0, %v245_v62  }
  0xb8   :  { %v253_v63 = vpop.permute.xlu0 %252  }
  0xb9   :  { %320 = vst.msk [vmem:[%s654_s1 + $0x1f] sm:$0x1] %vm7_vm0, %v253_v63   ;;  %321 = vst.msk [vmem:[%s654_s1 + $0x3e] sm:$0x2] %vm7_vm0, %v253_v63  }

// kernel: resblock_pallas.2
= control target key start
LH: loop header
LB: loop body
LE: loop exit
PB: predicated region body
PF: predicated region fallthrough
CT: control target
= control target key end

     0   :  { %s1114_s21 = smov 0   ;;  %s1116_s22 = smov 0   ;;  %s1251_s0 = inlined_call_operand.vmem [shape: bf16[2,256,128], index: 0, kind: input, shape index: {}]   ;;  %s1252_s1 = inlined_call_operand.vmem [shape: f32[2,1,128], index: 1, kind: input, shape index: {}]   ;;  %s1253_s2 = inlined_call_operand.vmem [shape: f32[2,1,128], index: 2, kind: input, shape index: {}]   ;;  %s1254_s3 = inlined_call_operand.vmem [shape: bf16[128,128], index: 3, kind: input, shape index: {}]   ;;  %s1255_s4 = inlined_call_operand.vmem [shape: f32[1,128], index: 4, kind: input, shape index: {}]   ;;  %s1256_s5 = inlined_call_operand.vmem [shape: bf16[2,256,128], index: 5, kind: output, shape index: {0}]   ;;  %s1257_s6 = inlined_call_operand.vmem [shape: f32[2,4,2,128], index: 6, kind: output, shape index: {1}]  }
   0x1   :  { %s1118_s23 = smov 0   ;;  %s1120_s24 = smov 0  }
   0x2   :  { %s1122_s25 = smov 0  }
   0x3 LB: > { %s26_s26 = sadd.s32 1, %s1069_s23  ;;  %s29_s27 = sadd.s32 1, %s1073_s24  ;;  %s1077_s25 = sphi %s1122_s25, %s17_s25   ;;  %s1073_s24 = sphi %s1120_s24, %s1261_s24   ;;  %s1069_s23 = sphi %s1118_s23, %s1260_s23   ;;  %s1065_s22 = sphi %s1116_s22, %s1259_s22   ;;  %s1061_s21 = sphi %s1114_s21, %s1258_s21  }
   0x4   : > { %p27_p0 = scmp.ge.s32.totalorder %s26_s26, 4  ;;  %p819_p1 = scmp.ge.s32.totalorder %s1077_s25, 1 }
   0x5   : > { %p254_p2 = scmp.lt.s32.totalorder %s1077_s25, 9 }
   0x6   : > { %s1263_s26 = smov (%p27_p0, %s26_s26), 0  ;;  %s1265_s27 = smov (!%p27_p0, %s29_s27), %s1073_s24 }
   0x7   : > { %p255_p3 = pnand %p819_p1, %p254_p2  ;;  %p31_p4 = scmp.ge.s32.totalorder %s1265_s27, 2 }
   0x8   : > { %v999_v0 = vld [vmem:[%s1254_s3] sm:$0xff] (!%p255_p3)   ;;  %s820_s30 = sshll.u32 (!%p255_p3), %s1061_s21, 3  ;;  %v1000_v1 = vld [vmem:[%s1254_s3 + $0x8] sm:$0xff] (!%p255_p3)   ;;  %p307_p5 = scmp.lt.s32.totalorder (!%p255_p3), %s1065_s22, 1  ;;  %v1001_v2 = vld [vmem:[%s1254_s3 + $0x10] sm:$0xff] (!%p255_p3)   ;;  %vm657_vm0 = vcmask (!%p255_p3), 1040384  }
   0x9   : > { %s1267_s27 = smov (%p31_p4, %s1265_s27), 0  ;;  %258 = sbr.rel (%p255_p3) target bundleno = 308 (0x134), region = 40 }
   0xa   : > { %919 = vmatprep.subr.bf16.mxu0 (!%p255_p3), %v999_v0  ;;  %943 = vmatprep.subr.bf16.mxu1 (!%p255_p3), %v999_v0  ;;  %p309_p6 = scmp.lt.s32.totalorder (!%p255_p3), %s820_s30, 31  ;;  %v1002_v3 = vld [vmem:[%s1254_s3 + $0x18] sm:$0xff] (!%p255_p3)   ;;  %v1003_v18 = vld [vmem:[%s1254_s3 + $0x20] sm:$0xff] (!%p255_p3)   ;;  %v1004_v30 = vld [vmem:[%s1254_s3 + $0x28] sm:$0xff] (!%p255_p3)   ;;  %p334_p7 = scmp.lt.s32.totalorder (!%p255_p3), %s1061_s21, 3 }
   0xb   : > { %920 = vmatpush3.bf16.msra.mxu0 (!%p255_p3), %v999_v0  ;;  %951 = vmatpush3.bf16.msra.mxu1 (!%p255_p3), %v999_v0  ;;  %v1005_v42 = vld [vmem:[%s1254_s3 + $0x30] sm:$0xff] (!%p255_p3)   ;;  %v1006_v45 = vld [vmem:[%s1254_s3 + $0x38] sm:$0xff] (!%p255_p3)  }
   0xc   : > { %921 = vmatprep.subr.bf16.mxu0 (!%p255_p3), %v1000_v1  ;;  %944 = vmatprep.subr.bf16.mxu1 (!%p255_p3), %v1000_v1 }
   0xf   : > { %922 = vmatpush3.bf16.msra.mxu0 (!%p255_p3), %v1000_v1  ;;  %952 = vmatpush3.bf16.msra.mxu1 (!%p255_p3), %v1000_v1 }
  0x10   : > { %s1269_s22 = smov (!%p307_p5, %s1065_s22), 1  ;;  %s1271_s30 = smov (!%p309_p6, %s820_s30), 31  ;;  %923 = vmatprep.subr.bf16.mxu0 %v1001_v2  ;;  %945 = vmatprep.subr.bf16.mxu1 %v1001_v2 }
  0x11   : > { %s821_s11 = sshll.u32 %s1269_s22, 5  ;;  %s318_s14 = scalar_lea.vmem %s1252_s1, %s1269_s22 }
  0x12   : > { %s1163_s15 = sadd.s32 %s821_s11, %s1271_s30  ;;  %s321_s30 = scalar_lea.vmem %s1253_s2, %s1269_s22  ;;  %v828_v4 = vld [vmem:[%s318_s14] ss:$0 sm:$0xff] }
  0x13   : > { %s822_s16 = sshll.u32 %s1163_s15, 2  ;;  %924 = vmatpush3.bf16.msra.mxu0 %v1001_v2  ;;  %953 = vmatpush3.bf16.msra.mxu1 %v1001_v2  ;;  %v829_v13 = vld [vmem:[%s321_s30] ss:$0 sm:$0xff]  ;;  %s1273_s21 = smov (!%p334_p7, %s1061_s21), 3 }
  0x14   : > { %s314_s28 = scalar_lea.vmem %s1251_s0, %s822_s16  ;;  %925 = vmatprep.subr.bf16.mxu0 %v1002_v3  ;;  %946 = vmatprep.subr.bf16.mxu1 %v1002_v3  ;;  %s330_s29 = scalar_lea.vmem %s1256_s5, %s822_s16 }
  0x15   : > { %v866_v5 = vld [vmem:[%s314_s28] sm:$0xff]   ;;  %v901_v6 = vld [vmem:[%s314_s28 + $0x8] sm:$0xff]   ;;  %v902_v7 = vld [vmem:[%s314_s28 + $0x10] sm:$0xff]   ;;  %s826_s15 = sshll.u32 %s1269_s22, 2 }
  0x16   : > { %v867_v8 = vunpack.c.l.bf16 %v866_v5  ;;  %v868_v9 = vunpack.c.h.bf16 %v866_v5  ;;  %v871_v10 = vunpack.c.l.bf16 %v901_v6  ;;  %v872_v11 = vunpack.c.h.bf16 %v901_v6  ;;  %v903_v12 = vld [vmem:[%s314_s28 + $0x18] sm:$0xff]   ;;  %s337_s16 = sadd.s32 %s826_s15, %s1273_s21 }
  0x17   : > { %v875_v14 = vunpack.c.l.bf16 %v902_v7  ;;  %v876_v15 = vunpack.c.h.bf16 %v902_v7  ;;  %v879_v16 = vunpack.c.l.bf16 %v903_v12  ;;  %v880_v17 = vunpack.c.h.bf16 %v903_v12  ;;  %926 = vmatpush3.bf16.msra.mxu0 %v1002_v3  ;;  %954 = vmatpush3.bf16.msra.mxu1 %v1002_v3  ;;  %s827_s7 = sshll.u32 %s337_s16, 1 }
  0x18   : > { %v364_v19 = vmul.f32 %v867_v8, %v828_v4  ;;  %v365_v20 = vmul.f32 %v868_v9, %v828_v4  ;;  %v366_v21 = vmul.f32 %v871_v10, %v828_v4  ;;  %v367_v22 = vmul.f32 %v872_v11, %v828_v4  ;;  %927 = vmatprep.subr.bf16.mxu0 %v1003_v18  ;;  %s339_s9 = scalar_lea.vmem %s1257_s6, %s827_s7 }
  0x19   : > { %v368_v23 = vmul.f32 %v875_v14, %v828_v4  ;;  %v369_v24 = vmul.f32 %v876_v15, %v828_v4  ;;  %v370_v25 = vmul.f32 %v879_v16, %v828_v4  ;;  %v371_v29 = vmul.f32 %v880_v17, %v828_v4  ;;  %947 = vmatprep.subr.bf16.mxu1 %v1003_v18 }
  0x1a   : > { %v1181_v26 = vadd.f32 %v829_v13, %v364_v19  ;;  %v1183_v27 = vadd.f32 %v829_v13, %v365_v20  ;;  %v1185_v28 = vadd.f32 %v829_v13, %v366_v21  ;;  %v1190_v31 = vadd.f32 %v829_v13, %v367_v22 }
  0x1b   : > { %v1192_v32 = vadd.f32 %v829_v13, %v368_v23  ;;  %v1194_v33 = vadd.f32 %v829_v13, %v369_v24  ;;  %v1199_v37 = vadd.f32 %v829_v13, %v370_v25  ;;  %v1202_v39 = vadd.f32 %v829_v13, %v371_v29  ;;  %928 = vmatpush3.bf16.msra.mxu0 %v1003_v18 }
  0x1c   : > { %v830_v34 = vmul.f32 -1.442695, %v1181_v26  ;;  %v831_v35 = vmul.f32 -1.442695, %v1183_v27  ;;  %v832_v36 = vmul.f32 -1.442695, %v1185_v28  ;;  %955 = vmatpush3.bf16.msra.mxu1 %v1003_v18  ;;  %929 = vmatprep.subr.bf16.mxu0 %v1004_v30 }
  0x1d   : > { %v833_v38 = vmul.f32 -1.442695, %v1190_v31  ;;  %v834_v40 = vmul.f32 -1.442695, %v1192_v32  ;;  %v835_v41 = vmul.f32 -1.442695, %v1194_v33  ;;  %948 = vmatprep.subr.bf16.mxu1 %v1004_v30 }
  0x1e   : > { %1007 = vpow2.f32 %v830_v34  ;;  %v836_v43 = vmul.f32 -1.442695, %v1199_v37  ;;  %v837_v44 = vmul.f32 -1.442695, %v1202_v39  ;;  %v838_v18 = vld [vmem:[%s1255_s4] ss:$0 sm:$0xff] }
  0x1f   : > { %1009 = vpow2.f32 %v831_v35  ;;  %930 = vmatpush3.bf16.msra.mxu0 %v1004_v30 }
  0x20   : > { %1011 = vpow2.f32 %v832_v36  ;;  %956 = vmatpush3.bf16.msra.mxu1 %v1004_v30  ;;  %931 = vmatprep.subr.bf16.mxu0 %v1005_v42 }
  0x21   : > { %1013 = vpow2.f32 %v833_v38  ;;  %949 = vmatprep.subr.bf16.mxu1 %v1005_v42 }
  0x22   : > { %1015 = vpow2.f32 %v834_v40 }
  0x23   : > { %1017 = vpow2.f32 %v835_v41  ;;  %932 = vmatpush3.bf16.msra.mxu0 %v1005_v42 }
  0x24   : > { %1019 = vpow2.f32 %v836_v43  ;;  %957 = vmatpush3.bf16.msra.mxu1 %v1005_v42  ;;  %933 = vmatprep.subr.bf16.mxu0 %v1006_v45 }
  0x25   : > { %1021 = vpow2.f32 %v837_v44  ;;  %950 = vmatprep.subr.bf16.mxu1 %v1006_v45 }
  0x27   : > { %934 = vmatpush3.bf16.msra.mxu0 %v1006_v45 }
  0x28   : > { %v1008_v46 = vpop.eup %1007  ;;  %958 = vmatpush3.bf16.msra.mxu1 %v1006_v45 }
  0x29   : > { %v1010_v47 = vpop.eup %1009  ;;  %v411_v48 = vadd.f32 1.0, %v1008_v46 }
  0x2a   : > { %v1012_v49 = vpop.eup %1011  ;;  %v412_v50 = vadd.f32 1.0, %v1010_v47 }
  0x2b   : > { %v1014_v51 = vpop.eup %1013  ;;  %1023 = vrcp.f32 %v411_v48  ;;  %v413_v52 = vadd.f32 1.0, %v1012_v49 }
  0x2c   : > { %v1016_v53 = vpop.eup %1015  ;;  %1025 = vrcp.f32 %v412_v50  ;;  %v414_v54 = vadd.f32 1.0, %v1014_v51 }
  0x2d   : > { %v1018_v55 = vpop.eup %1017  ;;  %1027 = vrcp.f32 %v413_v52  ;;  %v415_v56 = vadd.f32 1.0, %v1016_v53 }
  0x2e   : > { %v1020_v57 = vpop.eup %1019  ;;  %1029 = vrcp.f32 %v414_v54  ;;  %v416_v58 = vadd.f32 1.0, %v1018_v55 }
  0x2f   : > { %v1022_v59 = vpop.eup %1021  ;;  %1031 = vrcp.f32 %v415_v56  ;;  %v417_v60 = vadd.f32 1.0, %v1020_v57 }
  0x30   : > { %1033 = vrcp.f32 %v416_v58  ;;  %v418_v61 = vadd.f32 1.0, %v1022_v59 }
  0x31   : > { %1035 = vrcp.f32 %v417_v60 }
  0x32   : > { %1037 = vrcp.f32 %v418_v61 }
  0x35   : > { %v1024_v62 = vpop.eup %1023 }
  0x36   : > { %v1026_v63 = vpop.eup %1025  ;;  %v435_v0 = vmul.f32 %v1024_v62, %v1181_v26 }
  0x37   : > { %v1028_v1 = vpop.eup %1027  ;;  %v436_v2 = vmul.f32 %v1026_v63, %v1183_v27 }
  0x38   : > { %v1030_v3 = vpop.eup %1029  ;;  %v437_v4 = vmul.f32 %v1028_v1, %v1185_v28 }
  0x39   : > { %v1032_v5 = vpop.eup %1031  ;;  %v443_v6 = vpack.c.bf16 %v436_v2, %v435_v0  ;;  %v438_v7 = vmul.f32 %v1030_v3, %v1190_v31 }
  0x3a   : > { %v1034_v8 = vpop.eup %1033  ;;  %v439_v9 = vmul.f32 %v1032_v5, %v1192_v32 }
  0x3b   : > { %v1036_v10 = vpop.eup %1035  ;;  %935 = vmatprep.mubr.bf16.mxu0 %v443_v6  ;;  %v444_v11 = vpack.c.bf16 %v438_v7, %v437_v4  ;;  %v440_v12 = vmul.f32 %v1034_v8, %v1194_v33 }
  0x3c   : > { %v1038_v13 = vpop.eup %1037  ;;  %v441_v14 = vmul.f32 %v1036_v10, %v1199_v37 }
  0x3d   : > { %936 = vmatmul.mubr.bf16.vlgmr.msra.gmra.mrb[0].mxu0 %v444_v11  ;;  %v445_v15 = vpack.c.bf16 %v440_v12, %v439_v9  ;;  %v442_v16 = vmul.f32 %v1038_v13, %v1202_v39 }
  0x3f   : > { %939 = vmatprep.mubr.bf16.mxu1 %v445_v15  ;;  %v446_v17 = vpack.c.bf16 %v442_v16, %v441_v14 }
  0x41   : > { %940 = vmatmul.mubr.bf16.vlgmr.msra.gmra.mrb[0].mxu1 %v446_v17 }
 0x110   : > { %v937_v19 = vpop.f32.mrb[0].mxu0 }
 0x111   : > { %v552_v20 = vpop.f32.mrb[1].mxu0  ;;  %v561_v23 = vadd.f32 %v937_v19, %v838_v18 }
 0x112   : > { %v553_v21 = vadd.f32 %v838_v18, %v552_v20  ;;  %v938_v22 = vpop.f32.mrb[2].mxu0 }
 0x113   : > { %v564_v24 = vadd.f32 %v938_v22, %v838_v18  ;;  %v555_v25 = vpop.f32.mrb[3].mxu0  ;;  %v638_v39 = vmul.f32 %v561_v23, %v561_v23 }
 0x114   : > { %v556_v26 = vadd.f32 %v838_v18, %v555_v25  ;;  %v941_v27 = vpop.f32.mrb[0].mxu1  ;;  %v636_v28 = vmul.f32 %v553_v21, %v553_v21 }
 0x115   : > { %v889_v29 = vpack.c.bf16 %v564_v24, %v561_v23  ;;  %v577_v30 = vadd.f32 %v941_v27, %v838_v18  ;;  %v568_v31 = vpop.f32.mrb[1].mxu1  ;;  %v639_v43 = vmul.f32 %v564_v24, %v564_v24 }
 0x116   : > { %v884_v32 = vpack.c.bf16 %v556_v26, %v553_v21  ;;  %v623_v33 = vadd.f32 %v556_v26, %v553_v21  ;;  %v637_v34 = vmul.f32 %v556_v26, %v556_v26  ;;  %v569_v35 = vadd.f32 %v838_v18, %v568_v31  ;;  %v942_v36 = vpop.f32.mrb[2].mxu1 }
 0x117   : > { %904 = vst [vmem:[%s330_s29 + $0x8] sm:$0xff] %v889_v29   ;;  %v580_v37 = vadd.f32 %v942_v36, %v838_v18  ;;  %v571_v38 = vpop.f32.mrb[3].mxu1  ;;  %v642_v54 = vmul.f32 %v577_v30, %v577_v30 }
 0x118   : > { %885 = vst [vmem:[%s330_s29] sm:$0xff] %v884_v32   ;;  %v624_v40 = vadd.f32 %v623_v33, %v561_v23  ;;  %v644_v41 = vadd.f32 %v637_v34, %v636_v28  ;;  %v572_v42 = vadd.f32 %v838_v18, %v571_v38  ;;  %v640_v47 = vmul.f32 %v569_v35, %v569_v35 }
 0x119   : > { %v899_v44 = vpack.c.bf16 %v580_v37, %v577_v30  ;;  %v643_v57 = vmul.f32 %v580_v37, %v580_v37 }
 0x11a   : > { %v645_v45 = vadd.f32 %v644_v41, %v638_v39  ;;  %v625_v46 = vadd.f32 %v624_v40, %v564_v24  ;;  %v894_v48 = vpack.c.bf16 %v572_v42, %v569_v35  ;;  %v641_v53 = vmul.f32 %v572_v42, %v572_v42 }
 0x11b   : > { %906 = vst [vmem:[%s330_s29 + $0x18] sm:$0xff] %v899_v44  }
 0x11c   : > { %v626_v49 = vadd.f32 %v625_v46, %v569_v35  ;;  %v646_v50 = vadd.f32 %v645_v45, %v639_v43  ;;  %905 = vst [vmem:[%s330_s29 + $0x10] sm:$0xff] %v894_v48  }
 0x11e   : > { %v647_v51 = vadd.f32 %v646_v50, %v640_v47  ;;  %v627_v52 = vadd.f32 %v626_v49, %v572_v42 }
 0x120   : > { %v628_v55 = vadd.f32 %v627_v52, %v577_v30  ;;  %v648_v56 = vadd.f32 %v647_v51, %v641_v53 }
 0x122   : > { %v629_v58 = vadd.f32 %v628_v55, %v580_v37  ;;  %v649_v59 = vadd.f32 %v648_v56, %v642_v54 }
 0x124   : > { %v630_v60 = vrot.slane %v629_v58, 4  ;;  %v650_v61 = vadd.f32 %v649_v59, %v643_v57 }
 0x126   : > { %v631_v62 = vadd.f32 %v630_v60, %v629_v58  ;;  %v651_v63 = vrot.slane %v650_v61, 4 }
 0x128   : > { %v632_v0 = vrot.slane %v631_v62, 2  ;;  %v652_v1 = vadd.f32 %v651_v63, %v650_v61 }
 0x12a   : > { %v633_v2 = vadd.f32 %v632_v0, %v631_v62  ;;  %v653_v3 = vrot.slane %v652_v1, 2 }
 0x12c   : > { %v634_v4 = vrot.slane %v633_v2, 1  ;;  %v654_v5 = vadd.f32 %v653_v3, %v652_v1 }
 0x12e   : > { %v655_v6 = vrot.slane %v654_v5, 1  ;;  %v635_v7 = vadd.f32 %v634_v4, %v633_v2 }
 0x130   : > { %v656_v8 = vadd.f32 %v655_v6, %v654_v5 }
 0x132   : > { %v658_v9 = vsel %vm657_vm0, %v635_v7, %v656_v8 }
 0x133   : > { %659 = vst [vmem:[%s339_s9] sm:$0x3] %v658_v9 }
 0x134 PF: > { %s17_s25 = sadd.s32 1, %s1077_s25   ;;  %s1258_s21 = smov %s1069_s23 }
 0x135   : > { %p14_p8 = scmp.ge.s32.totalorder %s17_s25, 10   ;;  %s1259_s22 = smov %s1073_s24 }
 0x136   : > { %s1260_s23 = smov %s1263_s26  ;;  %s1261_s24 = smov %s1267_s27 }
 0x137   :  { %16 = sbr.rel (!%p14_p8) target bundleno = 3 (0x3), region = 88 }

// kernel: resblock_pallas.3
= control target key start
LH: loop header
LB: loop body
LE: loop exit
PB: predicated region body
PF: predicated region fallthrough
CT: control target
= control target key end

     0   :  { %s4828_s0 = inlined_call_operand.vmem [shape: bf16[2,256,128], index: 0, kind: input, shape index: {}, may-alias: {0,1,2}]   ;;  %s4829_s1 = inlined_call_operand.vmem [shape: bf16[2,256,128], index: 1, kind: input, shape index: {}, may-alias: {0,1,2}]   ;;  %s4830_s2 = inlined_call_operand.vmem [shape: bf16[2,256,128], index: 2, kind: input, shape index: {}, may-alias: {0,1,2}]   ;;  %s4831_s3 = inlined_call_operand.vmem [shape: bf16[2,256,128], index: 3, kind: input, shape index: {}]   ;;  %s4832_s4 = inlined_call_operand.vmem [shape: f32[2,1,128], index: 4, kind: input, shape index: {}]   ;;  %s4833_s5 = inlined_call_operand.vmem [shape: f32[2,1,128], index: 5, kind: input, shape index: {}]   ;;  %s4834_s6 = inlined_call_operand.vmem [shape: bf16[9,128,128], index: 6, kind: input, shape index: {}]   ;;  %s4835_s7 = inlined_call_operand.vmem [shape: bf16[128,128], index: 7, kind: input, shape index: {}]   ;;  %s4836_s8 = inlined_call_operand.vmem [shape: f32[1,128], index: 8, kind: input, shape index: {}]   ;;  %s4837_s9 = inlined_call_operand.hbm [shape: f32[2,256,128], index: 9, kind: output, shape index: {}]  }
   0x1   :  { %4845 = sst [smem:[#allocation13_spill]] %s4832_s4 }
   0x2   :  { %14 = vsyncpa [#allocation3], 0 }
   0x3   :  { %16 = vsyncpa [#allocation3 + $0x1], 0  ;;  %s3826_s30 = smov 0   ;;  %s3828_s10 = smov 0  }
   0x4   :  { %s3830_s11 = smov 0   ;;  %s3832_s12 = smov 0  }
   0x5   :  { %s3834_s13 = smov 0   ;;  %s3836_s14 = smov 0  }
   0x6   :  { %s3838_s15 = smov 0   ;;  %s3840_s16 = smov 0  }
   0x7 LB: > { %4846 = sst [smem:[#allocation5_spill]] %s3741_s30  ;;  %s2707_s17 = sadd.s32 4294967295, %s3769_s16   ;;  %s3769_s16 = sphi %s3840_s16, %s22_s16   ;;  %s3765_s15 = sphi %s3838_s15, %s4908_s15   ;;  %s3761_s14 = sphi %s3836_s14, %s4907_s14   ;;  %s3757_s13 = sphi %s3834_s13, %s4906_s13   ;;  %s3753_s12 = sphi %s3832_s12, %s4905_s12   ;;  %s3749_s11 = sphi %s3830_s11, %s4904_s11   ;;  %s3745_s10 = sphi %s3828_s10, %s4910_s10   ;;  %s3741_s30 = sphi %s3826_s30, %s4909_s30  }
   0x8   : > { %4847 = sst [smem:[#allocation6_spill]] %s3749_s11  ;;  %s2708_s18 = sadd.s32 4294967294, %s3769_s16  }
   0x9   : > { %4848 = sst [smem:[#allocation7_spill]] %s3761_s14  ;;  %s31_s19 = sadd.s32 1, %s3761_s14 }
   0xa   : > { %4849 = sst [smem:[#allocation8_spill]] %s3765_s15  ;;  %p32_p0 = scmp.ge.s32.totalorder %s31_s19, 4 }
   0xb   : > { %s34_s20 = sadd.s32 1, %s3765_s15  ;;  %p296_p1 = scmp.ne.s32.totalorder %s3749_s11, %s3745_s10 }
   0xc   : > { %p297_p2 = scmp.eq.s32.totalorder %s2707_s17, 7  ;;  %s4912_s19 = smov (%p32_p0, %s31_s19), 0 }
   0xd   : > { %4850 = sst [smem:[#allocation9_spill]] %s4912_s19  ;;  %s4914_s20 = smov (!%p32_p0, %s34_s20), %s3765_s15 }
   0xe   : > { %s282_s21 = ssub.s32 %s3761_s14, %s4912_s19  ;;  %p3877_p3 = por %p297_p2, %p296_p1 }
   0xf   : > { %p36_p4 = scmp.ge.s32.totalorder %s4914_s20, 2  ;;  %p302_p5 = scmp.ne.s32.totalorder %s3745_s10, %s3741_s30 }
  0x10   : > { %p303_p6 = scmp.eq.s32.totalorder %s2708_s18, 7  ;;  %p2717_p7 = scmp.ge.s32.totalorder %s3769_s16, 1 }
  0x11   : > { %s4916_s20 = smov (%p36_p4, %s4914_s20), 0  ;;  %p410_p9 = scmp.lt.s32.totalorder %s3769_s16, 9 }
  0x12   : > { %4852 = sst [smem:[#allocation10_spill]] %s4916_s20  ;;  %p3886_p8 = por %p303_p6, %p302_p5 }
  0x13   : > { %s281_s24 = ssub.s32 %s3765_s15, %s4916_s20  ;;  %s286_s25 = sadd.s32 1, %s3749_s11 }
  0x14   : > { %s4853_s23 = scalar_select %p3886_p8, 1, 0 }
  0x15   : > { %s283_s26 = sor.u32 %s282_s21, %s281_s24  ;;  %p411_p10 = pnand %p2717_p7, %p410_p9 }
  0x16   : > { %4854 = sst [smem:[#allocation11_spill]] %s4853_s23  ;;  %p284_p11 = scmp.eq.s32.totalorder %s283_s26, 0  ;;  %v3543_v0 = vld [vmem:[%s4834_s6 + $0x100] sm:$0xff] (!%p411_p10)   ;;  %v3544_v1 = vld [vmem:[%s4834_s6 + $0x108] sm:$0xff] (!%p411_p10)   ;;  %v3545_v3 = vld [vmem:[%s4834_s6 + $0x110] sm:$0xff] (!%p411_p10)   ;;  %v715_v45 = vlaneseq (!%p411_p10)  ;;  %vm3771_vm3 = vmmov (!%p411_p10), 1  }
  0x17   : > { %414 = sbr.rel (%p411_p10) target bundleno = 466 (0x1d2), region = 56  ;;  %s3901_s17 = sshll.u32 (!%p411_p10), %s3753_s12, 3  ;;  %3276 = vmatprep.subr.bf16.mxu0 (!%p411_p10), %v3543_v0  ;;  %v3546_v2 = vld [vmem:[%s4834_s6] sm:$0xff] (!%p411_p10)   ;;  %v3548_v4 = vld [vmem:[%s4834_s6 + $0x8] sm:$0xff] (!%p411_p10)   ;;  %v3550_v5 = vld [vmem:[%s4834_s6 + $0x10] sm:$0xff] (!%p411_p10)  }
  0x18   : > { %s3895_s27 = scalar_select %p284_p11, %s3749_s11, %s286_s25  }
  0x19   : > { %p492_p12 = scmp.lt.s32.totalorder (!%p411_p10), %s3757_s13, 1  ;;  %p494_p13 = scmp.lt.s32.totalorder (!%p411_p10), %s3901_s17, 31  ;;  %3277 = vmatpush3.bf16.msra.mxu0 (!%p411_p10), %v3543_v0  ;;  %3156 = vmatprep.subr.bf16.mxu1 (!%p411_p10), %v3546_v2  ;;  %v3547_v6 = vld [vmem:[%s4834_s6 + $0x118] sm:$0xff] (!%p411_p10)   ;;  %v3549_v8 = vld [vmem:[%s4834_s6 + $0x120] sm:$0xff] (!%p411_p10)   ;;  %v3551_v9 = vld [vmem:[%s4834_s6 + $0x128] sm:$0xff] (!%p411_p10)   ;;  %v4034_v58 = vshrl.u32 (!%p411_p10), %v715_v45, 7 }
  0x1a   : > { %4855 = sst [smem:[#allocation12_spill]] %s3895_s27  ;;  %3278 = vmatprep.subr.bf16.mxu0 (!%p411_p10), %v3544_v1  ;;  %3157 = vmatpush3.bf16.msra.mxu1 (!%p411_p10), %v3546_v2  ;;  %s4856_s4 = sld [smem:[#allocation13_spill]] (!%p411_p10)  ;;  %v3552_v7 = vld [vmem:[%s4834_s6 + $0x18] sm:$0xff] (!%p411_p10)   ;;  %v3554_v13 = vld [vmem:[%s4834_s6 + $0x20] sm:$0xff] (!%p411_p10)   ;;  %v3556_v21 = vld [vmem:[%s4834_s6 + $0x28] sm:$0xff] (!%p411_p10)  }
  0x1b   : > { %3158 = vmatprep.subr.bf16.mxu1 (!%p411_p10), %v3548_v4  ;;  %v3553_v25 = vld [vmem:[%s4834_s6 + $0x130] sm:$0xff] (!%p411_p10)   ;;  %v3555_v33 = vld [vmem:[%s4834_s6 + $0x138] sm:$0xff] (!%p411_p10)   ;;  %v4010_v39 = vld [vmem:[%s4834_s6 + $0x140] sm:$0xff] (!%p411_p10)   ;;  %p615_p5 = scmp.gt.s32.totalorder (!%p411_p10), %s3753_s12, 0  ;;  %p621_p6 = scmp.lt.s32.totalorder (!%p411_p10), %s3753_s12, 3  ;;  %vm902_vm8 = vcmp.lt.s32.totalorder (!%p411_p10), %v4034_v58, 1 }
  0x1c   : > { %v3558_v32 = vld [vmem:[%s4834_s6 + $0x30] sm:$0xff] (!%p411_p10)   ;;  %v3560_v38 = vld [vmem:[%s4834_s6 + $0x38] sm:$0xff] (!%p411_p10)   ;;  %v4026_v48 = vld [vmem:[%s4835_s7] sm:$0xff] (!%p411_p10)   ;;  %vm1023_vm13 = vcmp.lt.s32.totalorder (!%p411_p10), %v4034_v58, 7 }
  0x1d   : > { %3279 = vmatpush3.bf16.msra.mxu0 (!%p411_p10), %v3544_v1  ;;  %vm4117_vm4 = vmpackc.low (!%p411_p10), %vm3771_vm3, %vm3771_vm3 }
  0x1e   : > { %s3912_s25 = scalar_select %p492_p12, %s3757_s13, 1  ;;  %3280 = vmatprep.subr.bf16.mxu0 %v3545_v3  ;;  %3159 = vmatpush3.bf16.msra.mxu1 %v3548_v4 }
  0x1f   : > { %s495_s19 = scalar_select %p494_p13, %s3901_s17, 31  ;;  %3160 = vmatprep.subr.bf16.mxu1 %v3550_v5 }
  0x20   : > { %s3922_s20 = sshll.u32 %s3912_s25, 5  ;;  %s549_s27 = scalar_lea.vmem %s4856_s4, %s3912_s25 }
  0x21   : > { %s497_s21 = sadd.s32 %s3922_s20, %s495_s19  ;;  %s2722_s19 = sshll.u32 %s3753_s12, 2  ;;  %3281 = vmatpush3.bf16.msra.mxu0 %v3545_v3  ;;  %v3957_v10 = vld [vmem:[%s549_s27] ss:$0 sm:$0xff] }
  0x22   : > { %s3931_s14 = sshll.u32 %s497_s21, 2  ;;  %s552_s30 = scalar_lea.vmem %s4833_s5, %s3912_s25  ;;  %3282 = vmatprep.subr.bf16.mxu0 %v3547_v6  ;;  %3161 = vmatpush3.bf16.msra.mxu1 %v3550_v5 }
  0x23   : > { %s3945_s26 = scalar_lea.vmem %s4828_s0, %s3931_s14  ;;  %s2723_s4 = sadd.s32 4294967295, %s2722_s19  ;;  %v3959_v11 = vld [vmem:[%s552_s30] ss:$0 sm:$0xff]  ;;  %3162 = vmatprep.subr.bf16.mxu1 %v3552_v7 }
  0x24   : > { %p503_p0 = scmp.gt.s32.totalorder %s2723_s4, 0  ;;  %v3018_v12 = vld [vmem:[%s3945_s26] sm:$0xff]   ;;  %s520_s15 = sadd.s32 4, %s2722_s19  ;;  %v3033_v16 = vld [vmem:[%s3945_s26 + $0x8] sm:$0xff]   ;;  %v3034_v51 = vld [vmem:[%s3945_s26 + $0x10] sm:$0xff]  }
  0x25   : > { %3283 = vmatpush3.bf16.msra.mxu0 %v3547_v6  ;;  %v3019_v14 = vunpack.c.l.bf16 %v3018_v12  ;;  %v3020_v15 = vunpack.c.h.bf16 %v3018_v12  ;;  %p521_p1 = scmp.lt.s32.totalorder %s520_s15, 15  ;;  %v3023_v19 = vunpack.c.l.bf16 %v3033_v16  ;;  %v3024_v20 = vunpack.c.h.bf16 %v3033_v16  ;;  %v3035_v0 = vld [vmem:[%s3945_s26 + $0x18] sm:$0xff]  }
  0x26   : > { %s4918_s4 = smov (!%p503_p0, %s2723_s4), 0  ;;  %3284 = vmatprep.subr.bf16.mxu0 %v3549_v8  ;;  %3163 = vmatpush3.bf16.msra.mxu1 %v3552_v7  ;;  %v3027_v55 = vunpack.c.l.bf16 %v3034_v51  ;;  %v3028_v59 = vunpack.c.h.bf16 %v3034_v51  ;;  %v3031_v12 = vunpack.c.l.bf16 %v3035_v0 }
  0x27   : > { %v643_v17 = vmul.f32 %v3019_v14, %v3957_v10  ;;  %v644_v18 = vmul.f32 %v3020_v15, %v3957_v10  ;;  %s2724_s30 = sshll.u32 %s4918_s4, 1  ;;  %3164 = vmatprep.subr.bf16.mxu1 %v3554_v13  ;;  %v645_v24 = vmul.f32 %v3023_v19, %v3957_v10  ;;  %s4920_s15 = smov (!%p521_p1, %s520_s15), 15  ;;  %v646_v26 = vmul.f32 %v3024_v20, %v3957_v10 }
  0x28   : > { %p508_p2 = scmp.lt.s32.totalorder %s2724_s30, 31  ;;  %s2728_s28 = sshll.u32 %s4920_s15, 1  ;;  %v647_v3 = vmul.f32 %v3027_v55, %v3957_v10  ;;  %v648_v4 = vmul.f32 %v3028_v59, %v3957_v10  ;;  %v3032_v14 = vunpack.c.h.bf16 %v3035_v0  ;;  %v722_v55 = vadd.s32 48, %v4034_v58 }
  0x29   : > { %3285 = vmatpush3.bf16.msra.mxu0 %v3549_v8  ;;  %v3972_v22 = vadd.f32 %v3959_v11, %v643_v17  ;;  %v3975_v23 = vadd.f32 %v3959_v11, %v644_v18  ;;  %v3986_v29 = vadd.f32 %v3959_v11, %v645_v24  ;;  %v3989_v30 = vadd.f32 %v3959_v11, %v646_v26  ;;  %p526_p4 = scmp.lt.s32.totalorder %s2728_s28, 31 }
  0x2a   : > { %3286 = vmatprep.subr.bf16.mxu0 %v3551_v9  ;;  %s4922_s30 = smov (!%p508_p2, %s2724_s30), 31  ;;  %3165 = vmatpush3.bf16.msra.mxu1 %v3554_v13  ;;  %v4049_v8 = vadd.f32 %v3959_v11, %v647_v3  ;;  %v732_v13 = vand.u32 15, %v4034_v58  ;;  %v649_v17 = vmul.f32 %v3031_v12, %v3957_v10  ;;  %v718_v18 = vadd.s32 16, %v4034_v58 }
  0x2b   : > { %v2740_v27 = vmul.f32 -1.442695, %v3972_v22  ;;  %v2741_v28 = vmul.f32 -1.442695, %v3975_v23  ;;  %s511_s29 = sadd.s32 %s3922_s20, %s4922_s30  ;;  %3166 = vmatprep.subr.bf16.mxu1 %v3556_v21  ;;  %v2742_v31 = vmul.f32 -1.442695, %v3986_v29  ;;  %v650_v19 = vmul.f32 %v3032_v14, %v3957_v10  ;;  %s4076_s30 = scalar_lea.vmem %s4831_s3, %s3931_s14 }
  0x2c   : > { %s2726_s23 = sshll.u32 %s511_s29, 2  ;;  %v2743_v34 = vmul.f32 -1.442695, %v3989_v30  ;;  %s4924_s28 = smov (!%p526_p4, %s2728_s28), 31  ;;  %v2744_v15 = vmul.f32 -1.442695, %v4049_v8  ;;  %v4062_v20 = vadd.f32 %v3959_v11, %v649_v17 }
  0x2d   : > { %3287 = vmatpush3.bf16.msra.mxu0 %v3551_v9  ;;  %3627 = vpow2.f32 %v2740_v27  ;;  %s513_s27 = scalar_lea.vmem %s4829_s1, %s2726_s23  ;;  %s529_s21 = sadd.s32 %s3922_s20, %s4924_s28  ;;  %v4052_v9 = vadd.f32 %v3959_v11, %v648_v4  ;;  %vm4064_vm0 = vcmp.ge.s32.totalorder %v732_v13, 1  ;;  %v4069_v24 = vadd.f32 %v3959_v11, %v650_v19  ;;  %v3561_v13 = vld [vmem:[%s4834_s6 + $0x150] sm:$0xff]   ;;  %v3588_v14 = vld [vmem:[%s4834_s6 + $0x60] sm:$0xff]  }
  0x2e   : > { %3288 = vmatprep.subr.bf16.mxu0 %v3553_v25  ;;  %3629 = vpow2.f32 %v2741_v28  ;;  %v3010_v35 = vld [vmem:[%s513_s27] sm:$0xff]   ;;  %3167 = vmatpush3.bf16.msra.mxu1 %v3556_v21  ;;  %s2730_s11 = sshll.u32 %s529_s21, 2  ;;  %v721_v27 = vadd.s32 40, %v4034_v58  ;;  %vm945_vm1 = vmpackc.low %vm4064_vm0, %vm4064_vm0  ;;  %s488_s23 = sand.u32 1, %s3745_s10  }
  0x2f   : > { %3631 = vpow2.f32 %v2742_v31  ;;  %v3011_v36 = vunpack.c.l.bf16 %v3010_v35  ;;  %v3012_v37 = vunpack.c.h.bf16 %v3010_v35  ;;  %3168 = vmatprep.subr.bf16.mxu1 %v3558_v32  ;;  %s531_s15 = scalar_lea.vmem %s4830_s2, %s2730_s11  ;;  %v2745_v16 = vmul.f32 -1.442695, %v4052_v9  ;;  %s2718_s25 = sshll.u32 %s488_s23, 6 }
  0x30   : > { %3633 = vpow2.f32 %v2743_v34  ;;  %v3014_v44 = vld [vmem:[%s531_s15] sm:$0xff]   ;;  %s4084_s27 = scalar_select %p615_p5, 1, 0 }
  0x31   : > { %3289 = vmatpush3.bf16.msra.mxu0 %v3553_v25  ;;  %v569_v40 = vmul.f32 %v3011_v36, %v3957_v10  ;;  %v570_v41 = vmul.f32 %v3012_v37, %v3957_v10  ;;  %v3015_v46 = vunpack.c.l.bf16 %v3014_v44  ;;  %v3016_v47 = vunpack.c.h.bf16 %v3014_v44  ;;  %s4100_s14 = scalar_select %p621_p6, 1, 0 }
  0x32   : > { %3290 = vmatprep.subr.bf16.mxu0 %v3555_v33  ;;  %3169 = vmatpush3.bf16.msra.mxu1 %v3558_v32  ;;  %v719_v25 = vadd.s32 24, %v4034_v58  ;;  %v746_v32 = vand.u32 15, %v718_v18  ;;  %v3567_v18 = vld [vmem:[%s4834_s6 + $0x168] sm:$0xff]   ;;  %s3005_s28 = sshll.u32 %s3757_s13, 5  ;;  %s490_s26 = scalar_lea.vmem [#allocation2], %s2718_s25 }
  0x33   : > { %v4018_v42 = vadd.f32 %v3959_v11, %v569_v40  ;;  %v4021_v43 = vadd.f32 %v3959_v11, %v570_v41  ;;  %3170 = vmatprep.subr.bf16.mxu1 %v3560_v38  ;;  %v597_v53 = vmul.f32 %v3015_v46, %v3957_v10  ;;  %v598_v54 = vmul.f32 %v3016_v47, %v3957_v10  ;;  %s2550_s24 = sadd.s32 %s3005_s28, %s3901_s17  ;;  %s2553_s13 = sshll.u32 %s490_s26, 4  ;;  %s4772_s13 = int_to_ptr.vmem [resolvable:$true] %s2553_s13 }
  0x34   : > { %v2746_v10 = vmul.f32 -1.442695, %v4062_v20  ;;  %v753_v37 = vand.u32 15, %v719_v25  ;;  %v767_v41 = vand.u32 15, %v721_v27  ;;  %vm4102_vm2 = vcmp.ge.s32.totalorder %v746_v32, 1  ;;  %s4776_s12 = scalar_lea.sflag [#allocation3], %s488_s23 }
  0x35   : > { %3291 = vmatpush3.bf16.msra.mxu0 %v3555_v33  ;;  %v2736_v49 = vmul.f32 -1.442695, %v4018_v42  ;;  %v2737_v50 = vmul.f32 -1.442695, %v4021_v43  ;;  %v4037_v62 = vadd.f32 %v3959_v11, %v597_v53  ;;  %v4040_v63 = vadd.f32 %v3959_v11, %v598_v54  ;;  %vm947_vm6 = vmpackc.low %vm4102_vm2, %vm4102_vm2  ;;  %s3675_s4 = scalar_lea.vmem %s4772_s13, 1024  ;;  %s3773_s21 = smov [#allocation2]  }
  0x36   : > { %3300 = vmatprep.subr.bf16.mxu0 %v4010_v39  ;;  %3171 = vmatpush3.bf16.msra.mxu1 %v3560_v38  ;;  %v2747_v33 = vmul.f32 -1.442695, %v4069_v24  ;;  %v3772_v53 = vmov 0   ;;  %vm4127_vm5 = vcmp.le.s32.totalorder %v753_v37, 14  ;;  %vm4141_vm7 = vcmp.le.s32.totalorder %v767_v41, 14  ;;  %p3676_p7 = scmp.ne.s32.totalorder %s4772_s13, %s3675_s4  ;;  %s3679_s29 = sshll.u32 %s3773_s21, 4  ;;  %s3680_s29 = int_to_ptr.vmem [resolvable:$false] %s3679_s29 }
  0x37   : > { %v3628_v52 = vpop.eup %3627  ;;  %3635 = vpow2.f32 %v2736_v49  ;;  %3180 = vmatprep.subr.bf16.mxu1 %v4026_v48  ;;  %v2738_v6 = vmul.f32 -1.442695, %v4037_v62  ;;  %v2739_v7 = vmul.f32 -1.442695, %v4040_v63  ;;  %v4151_v4 = vsel %vm4117_vm4, 65537, %v3772_v53  ;;  %vm1069_vm9 = vmpackc.low %vm4127_vm5, %vm4127_vm5  ;;  %p3682_p11 = scmp.lt.s32.totalorder %s4772_s13, %s3680_s29 }
  0x38   : > { %v3630_v56 = vpop.eup %3629  ;;  %v683_v57 = vadd.f32 1.0, %v3628_v52  ;;  %3637 = vpow2.f32 %v2737_v50  ;;  %vm1071_vm10 = vmpackc.low %vm4141_vm7, %vm4141_vm7  ;;  %v4207_v32 = vadd.s32 56, %v4034_v58  ;;  %p3677_p9 = pnand %p3676_p7, %p3877_p3 }
  0x39   : > { %v3632_v60 = vpop.eup %3631  ;;  %v684_v61 = vadd.f32 1.0, %v3630_v56 }
  0x3a   : > { %v3634_v1 = vpop.eup %3633  ;;  %3639 = vrcp.f32 %v683_v57  ;;  %v685_v2 = vadd.f32 1.0, %v3632_v60  ;;  %v617_v60 = vstv %s4084_s27  ;;  %s3006_s27 = sshll.u32 %s2550_s24, 7  ;;  %p3678_p10 = pneg %p3677_p9 }
  0x3b   : > { %3641 = vrcp.f32 %v684_v61  ;;  %v686_v5 = vadd.f32 1.0, %v3634_v1  ;;  %v623_v1 = vstv %s4100_s14  ;;  %vm4164_vm11 = vcmp.eq.s32.totalorder %v617_v60, 1  ;;  %s4770_s17 = scalar_lea.hbm %s4837_s9, %s3006_s27 }
  0x3c   : > { %3643 = vrcp.f32 %v685_v2  ;;  %vm4168_vm12 = vcmp.eq.s32.totalorder %v623_v1, 1 }
  0x3d   : > { %3645 = vrcp.f32 %v686_v5 }
  0x3e   : > { %3647 = vpow2.f32 %v2738_v6  ;;  %v959_v6 = vsel %vm947_vm6, 65537, %v3772_v53 }
  0x3f   : > { %3649 = vpow2.f32 %v2739_v7  ;;  %v774_v7 = vand.u32 15, %v722_v55  ;;  %v2749_v25 = vcombine.low %v959_v6, %v4151_v4 }
  0x40   : > { %3651 = vpow2.f32 %v2744_v15 }
  0x41   : > { %3653 = vpow2.f32 %v2745_v16  ;;  %v3636_v26 = vpop.eup %3635  ;;  %vm4202_vm15 = vcmp.ge.s32.totalorder %v774_v7, 1  ;;  %vm4237_vm3 = vcmp.ne.s16.totalorder %v2749_v25, 0 }
  0x42   : > { %v3638_v28 = vpop.eup %3637  ;;  %v585_v31 = vadd.f32 1.0, %v3636_v26  ;;  %3655 = vpow2.f32 %v2746_v10  ;;  %v1081_v26 = vsel %vm1069_vm9, 65537, %v3772_v53  ;;  %v4194_v10 = vsel %vm1071_vm10, 65537, %v3772_v53  ;;  %vm951_vm2 = vmpackc.low %vm4202_vm15, %vm4202_vm15 }
  0x43   : > { %v586_v34 = vadd.f32 1.0, %v3638_v28  ;;  %v3563_v28 = vld [vmem:[%s4834_s6 + $0x158] sm:$0xff]   ;;  %v4270_v1 = vsel %vm951_vm2, 65537, %v3772_v53 }
  0x44   : > { %v3640_v11 = vpop.eup %3639  ;;  %3657 = vrcp.f32 %v585_v31 }
  0x45   : > { %v3642_v35 = vpop.eup %3641  ;;  %v4087_v36 = vmul.f32 %v3640_v11, %v3972_v22  ;;  %3659 = vrcp.f32 %v586_v34 }
  0x46   : > { %v3644_v38 = vpop.eup %3643  ;;  %v4090_v40 = vmul.f32 %v3642_v35, %v3975_v23  ;;  %3661 = vpow2.f32 %v2747_v33  ;;  %v720_v23 = vadd.s32 32, %v4034_v58 }
  0x47   : > { %v3646_v44 = vpop.eup %3645  ;;  %v4096_v45 = vmul.f32 %v3644_v38, %v3986_v29  ;;  %v3559_v29 = vld [vmem:[%s4834_s6 + $0x148] sm:$0xff]   ;;  %v892_v33 = vrot.slane %v4087_v36, 7 }
  0x48   : > { %v3648_v46 = vpop.eup %3647  ;;  %v4109_v47 = vpack.c.bf16 %v4090_v40, %v4087_v36  ;;  %v4112_v49 = vmul.f32 %v3646_v44, %v3989_v30  ;;  %v957_v30 = vsel %vm945_vm1, 65537, %v3772_v53  ;;  %v760_v3 = vand.u32 15, %v720_v23  ;;  %v3566_v44 = vld [vmem:[%s4835_s7 + $0x10] sm:$0xff]  }
  0x49   : > { %v3650_v50 = vpop.eup %3649  ;;  %v607_v51 = vadd.f32 1.0, %v3648_v46  ;;  %v2748_v16 = vcombine.low %v957_v30, %v4151_v4  ;;  %v893_v11 = vrot.slane %v4090_v40, 7  ;;  %v1014_v34 = vrot.slane %v4090_v40, 1  ;;  %v3565_v46 = vld [vmem:[%s4834_s6 + $0x160] sm:$0xff]  }
  0x4a   : > { %v3652_v56 = vpop.eup %3651  ;;  %3292 = vmatprep.mubr.bf16.mxu0 %v4109_v47  ;;  %v4135_v57 = vpack.c.bf16 %v4112_v49, %v4096_v45  ;;  %v608_v59 = vadd.f32 1.0, %v3650_v50  ;;  %vm4174_vm14 = vcmp.ge.s32.totalorder %v760_v3, 1  ;;  %v1015_v38 = vrot.slane %v4096_v45, 1 }
  0x4b   : > { %v3654_v0 = vpop.eup %3653  ;;  %3663 = vrcp.f32 %v607_v51  ;;  %v687_v2 = vadd.f32 1.0, %v3652_v56  ;;  %vm949_vm0 = vmpackc.low %vm4174_vm14, %vm4174_vm14  ;;  %v894_v41 = vrot.slane %v4096_v45, 7  ;;  %v1013_v40 = vrot.slane %v4087_v36, 1  ;;  %v3570_v45 = vld [vmem:[%s4835_s7 + $0x20] sm:$0xff]   ;;  %v3625_v36 = vld [vmem:[%s4834_s6 + $0xf0] sm:$0xff]  }
  0x4c   : > { %3293 = vmatmul.mubr.bf16.vlgmr.msra.gmra.mrb[0].mxu0 %v4135_v57  ;;  %3665 = vrcp.f32 %v608_v59  ;;  %v688_v5 = vadd.f32 1.0, %v3654_v0  ;;  %v3656_v12 = vpop.eup %3655  ;;  %vm4226_vm1 = vcmp.ne.s16.totalorder %v2748_v16, 0  ;;  %v2755_v51 = vcombine.low %v4151_v4, %v1081_v26 }
  0x4d   : > { %3301 = vmatpush3.bf16.msra.mxu0 %v4010_v39  ;;  %3667 = vrcp.f32 %v687_v2  ;;  %v689_v17 = vadd.f32 1.0, %v3656_v12  ;;  %v961_v52 = vsel %vm949_vm0, 65537, %v3772_v53  ;;  %v911_v56 = vsel %vm902_vm8, %v892_v33, %v893_v11  ;;  %v3612_v39 = vld [vmem:[%s4834_s6 + $0xb8] sm:$0xff]  }
  0x4e   : > { %3302 = vmatprep.subr.bf16.mxu0 %v3559_v29  ;;  %3669 = vrcp.f32 %v688_v5  ;;  %v3658_v15 = vpop.eup %3657  ;;  %v895_v59 = vrot.slane %v4112_v49, 7  ;;  %v1031_v0 = vsel %vm1023_vm13, %v1014_v34, %v1015_v38  ;;  %vm4300_vm4 = vcmp.ne.s16.totalorder %v2755_v51, 0 }
  0x4f   : > { %v3660_v19 = vpop.eup %3659  ;;  %v4179_v21 = vmul.f32 %v3658_v15, %v4018_v42  ;;  %3671 = vrcp.f32 %v689_v17  ;;  %v781_v15 = vand.u32 15, %v4207_v32 }
  0x50   : > { %v3662_v27 = vpop.eup %3661  ;;  %v4197_v42 = vmul.f32 %v3660_v19, %v4021_v43  ;;  %v725_v19 = vadd.s32 72, %v4034_v58 }
  0x51   : > { %3303 = vmatpush3.bf16.msra.mxu0 %v3559_v29  ;;  %v690_v43 = vadd.f32 1.0, %v3662_v27  ;;  %v4218_v35 = vsel %vm4164_vm11, %v4179_v21, 0.0  ;;  %vm4348_vm5 = vcmp.le.s32.totalorder %v781_v15, 14  ;;  %v3571_v15 = vld [vmem:[%s4834_s6 + $0x178] sm:$0xff]  }
  0x52   : > { %3304 = vmatprep.subr.bf16.mxu0 %v3561_v13  ;;  %v620_v37 = vsel %vm4164_vm11, %v4197_v42, 0.0  ;;  %v1011_v22 = vrot.slane %v4218_v35, 1  ;;  %v890_v55 = vrot.slane %v4218_v35, 7  ;;  %vm1073_vm7 = vmpackc.low %vm4348_vm5, %vm4348_vm5 }
  0x53   : > { %v1012_v23 = vrot.slane %v620_v37, 1  ;;  %3673 = vrcp.f32 %v690_v43  ;;  %v891_v50 = vrot.slane %v620_v37, 7  ;;  %v3569_v43 = vld [vmem:[%s4834_s6 + $0x170] sm:$0xff]   ;;  %v1032_v37 = vsel %vm1023_vm13, %v1013_v40, %v1014_v34 }
  0x55   : > { %v3664_v29 = vpop.eup %3663  ;;  %3305 = vmatpush3.bf16.msra.mxu0 %v3561_v13  ;;  %v4282_v5 = vsel %vm1023_vm13, %v1012_v23, %v1013_v40  ;;  %v4288_v6 = vsel %vm1023_vm13, %v1011_v22, %v1012_v23  ;;  %v912_v12 = vsel %vm902_vm8, %v891_v50, %v892_v33  ;;  %v913_v17 = vsel %vm902_vm8, %v890_v55, %v891_v50  ;;  %v3620_v13 = vld [vmem:[%s4834_s6 + $0xd8] sm:$0xff]  }
  0x56   : > { %v3666_v30 = vpop.eup %3665  ;;  %v4249_v54 = vmul.f32 %v3664_v29, %v4037_v62  ;;  %3306 = vmatprep.subr.bf16.mxu0 %v3563_v28  ;;  %v910_v62 = vsel %vm902_vm8, %v893_v11, %v894_v41  ;;  %v1036_v31 = vpack.c.bf16 %v4282_v5, %v4288_v6  ;;  %v4328_v33 = vpack.c.bf16 %v911_v56, %v912_v12  ;;  %v3564_v11 = vld [vmem:[%s4835_s7 + $0x8] sm:$0xff]   ;;  %v3610_v5 = vld [vmem:[%s4834_s6 + $0xb0] sm:$0xff]   ;;  %v3615_v6 = vld [vmem:[%s4834_s6 + $0x218] sm:$0xff]  }
  0x57   : > { %v3668_v60 = vpop.eup %3667  ;;  %v4256_v61 = vmul.f32 %v3666_v30, %v4040_v63  ;;  %v795_v40 = vand.u32 15, %v725_v19 }
  0x58   : > { %v3670_v2 = vpop.eup %3669  ;;  %v4275_v63 = vsel %vm4168_vm12, %v4249_v54, 0.0  ;;  %v4278_v3 = vmul.f32 %v3668_v60, %v4049_v8  ;;  %v3002_v60 = vld [vmem:[%s4836_s8] ss:$0 sm:$0xff] }
  0x59   : > { %v4293_v7 = vsel %vm4168_vm12, %v4256_v61, 0.0  ;;  %3307 = vmatpush3.bf16.msra.mxu0 %v3563_v28  ;;  %v4298_v8 = vmul.f32 %v3670_v2, %v4052_v9  ;;  %v909_v9 = vsel %vm902_vm8, %v894_v41, %v895_v59  ;;  %v3672_v25 = vpop.eup %3671  ;;  %v1021_v28 = vrot.slane %v4275_v63, 1 }
  0x5a   : > { %v901_v16 = vrot.slane %v4293_v7, 7  ;;  %3308 = vmatprep.subr.bf16.mxu0 %v3565_v46  ;;  %v1022_v26 = vrot.slane %v4293_v7, 1  ;;  %v2750_v41 = vcombine.low %v961_v52, %v4151_v4  ;;  %v4341_v29 = vmul.f32 %v3672_v25, %v4062_v20 }
  0x5b   : > { %v4319_v27 = vpack.c.bf16 %v4298_v8, %v4278_v3  ;;  %v896_v50 = vrot.slane %v4278_v3, 7  ;;  %v897_v51 = vrot.slane %v4298_v8, 7  ;;  %v4346_v56 = vpack.c.bf16 %v909_v9, %v910_v62 }
  0x5c   : > { %v914_v32 = vsel %vm902_vm8, %v901_v16, %v890_v55  ;;  %v1016_v55 = vrot.slane %v4112_v49, 1  ;;  %v4363_v52 = vsel %vm1023_vm13, %v1021_v28, %v1022_v26  ;;  %vm4373_vm6 = vcmp.ne.s16.totalorder %v2750_v41, 0  ;;  %v3581_v49 = vld [vmem:[%s4834_s6 + $0x198] sm:$0xff]  }
  0x5d   : > { %v915_v23 = vpack.c.bf16 %v913_v17, %v914_v32  ;;  %3309 = vmatpush3.bf16.msra.mxu0 %v3565_v46  ;;  %3296 = vmatprep.mubr.bf16.mxu0 %v4319_v27  ;;  %v3674_v30 = vpop.eup %3673  ;;  %v2972_v46 = vpack.c.bf16 %v4256_v61, %v4249_v54  ;;  %v2751_v62 = vcombine.low %v4270_v1, %v4151_v4  ;;  %v1017_v12 = vrot.slane %v4278_v3, 1  ;;  %v3573_v1 = vld [vmem:[%s4834_s6 + $0x180] sm:$0xff]   ;;  %v3619_v61 = vld [vmem:[%s4834_s6 + $0x228] sm:$0xff]  }
  0x5e   : > { %3310 = vmatprep.subr.bf16.mxu0 %v3567_v18  ;;  %v4355_v20 = vmul.f32 %v3674_v30, %v4069_v24  ;;  %v4371_v24 = vpack.c.bf16 %v1031_v0, %v1032_v37  ;;  %v4383_v2 = vsel %vm1023_vm13, %v1022_v26, %v1011_v22  ;;  %v907_v35 = vsel %vm902_vm8, %v896_v50, %v897_v51  ;;  %v3578_v32 = vld [vmem:[%s4076_s30] sm:$0xff]  }
  0x5f   : > { %3172 = vmatprep.mubr.msk.bf16.mxu1 %vm4226_vm1, %v915_v23  ;;  %v1041_v22 = vpack.c.bf16 %v4383_v2, %v4363_v52  ;;  %vm4411_vm9 = vcmp.le.s32.totalorder %v795_v40, 14  ;;  %v2756_v3 = vcombine.low %v4151_v4, %v4194_v10  ;;  %v1019_v9 = vrot.slane %v4341_v29, 1  ;;  %v3572_v40 = vld [vmem:[%s4835_s7 + $0x28] sm:$0xff]   ;;  %v3614_v54 = vld [vmem:[%s4834_s6 + $0xc0] sm:$0xff]  }
  0x60   : > { %3173 = vmatmul.mubr.msk.bf16.vlgmr.msra.gmra.mrb[0].mxu1 %vm4237_vm3, %v4328_v33  ;;  %v4389_v0 = vpack.c.bf16 %v4355_v20, %v4341_v29  ;;  %v1029_v19 = vsel %vm1023_vm13, %v1016_v55, %v1017_v12  ;;  %v1030_v25 = vsel %vm1023_vm13, %v1015_v38, %v1016_v55  ;;  %vm4436_vm10 = vcmp.ne.s16.totalorder %v2751_v62, 0  ;;  %vm1075_vm14 = vmpackc.low %vm4411_vm9, %vm4411_vm9 }
  0x61   : > { %3181 = vmatpush3.bf16.msra.mxu1 %v4026_v48  ;;  %3311 = vmatpush3.bf16.msra.mxu0 %v3567_v18  ;;  %v908_v48 = vsel %vm902_vm8, %v895_v59, %v896_v50  ;;  %v3568_v59 = vld [vmem:[%s4835_s7 + $0x18] sm:$0xff]   ;;  %v1018_v18 = vrot.slane %v4298_v8, 1  ;;  %v1085_v10 = vsel %vm1073_vm7, 65537, %v3772_v53  ;;  %v4453_v38 = vpack.c.bf16 %v1029_v19, %v1030_v25  ;;  %v3575_v50 = vld [vmem:[%s4834_s6 + $0x188] sm:$0xff]   ;;  %vm2808_vm9 = vmpackc.low %vm4164_vm11, %vm4164_vm11 }
  0x62   : > { %3182 = vmatprep.subr.bf16.mxu1 %v3564_v11  ;;  %3312 = vmatprep.subr.bf16.mxu0 %v3569_v43  ;;  %v4426_v17 = vpack.c.bf16 %v907_v35, %v908_v48  ;;  %v2757_v37 = vcombine.low %v4151_v4, %v1085_v10  ;;  %vm4463_vm15 = vcmp.ne.s16.totalorder %v2756_v3, 0  ;;  %v1020_v23 = vrot.slane %v4355_v20, 1  ;;  %v3580_v25 = vld [vmem:[%s4076_s30 + $0x8] sm:$0xff]  }
  0x63   : > { %3297 = vmatmul.mubr.bf16.gmra.mrb[4].mxu0 %v4389_v0  ;;  %3176 = vmatprep.mubr.msk.bf16.mxu1 %vm4373_vm6, %v4346_v56  ;;  %v1087_v30 = vsel %vm1075_vm14, 65537, %v3772_v53  ;;  %v724_v3 = vadd.s32 64, %v4034_v58  ;;  %v726_v10 = vadd.s32 80, %v4034_v58 }
  0x64   : > { %3316 = vmatprep.mubr.msk.bf16.mxu0 %vm4300_vm4, %v4371_v24  ;;  %vm4477_vm0 = vcmp.ne.s16.totalorder %v2757_v37, 0  ;;  %v1026_v62 = vsel %vm1023_vm13, %v1019_v9, %v1020_v23 }
  0x65   : > { %3183 = vmatpush3.bf16.msra.mxu1 %v3564_v11  ;;  %3313 = vmatpush3.bf16.msra.mxu0 %v3569_v43  ;;  %v1027_v11 = vsel %vm1023_vm13, %v1018_v18, %v1019_v9  ;;  %v1028_v43 = vsel %vm1023_vm13, %v1017_v12, %v1018_v18  ;;  %v2758_v12 = vcombine.low %v4151_v4, %v1087_v30  ;;  %v3579_v18 = vld [vmem:[%s4834_s6 + $0x40] sm:$0xff]   ;;  %v3585_v9 = vld [vmem:[%s4834_s6 + $0x1a8] sm:$0xff]   ;;  %v788_v19 = vand.u32 15, %v724_v3  ;;  %v3594_v30 = vld [vmem:[%s4076_s30 + $0x18] sm:$0xff]  }
  0x66   : > { %3184 = vmatprep.subr.bf16.mxu1 %v3566_v44  ;;  %3314 = vmatprep.subr.bf16.mxu0 %v3571_v15  ;;  %v4472_v55 = vpack.c.bf16 %v1027_v11, %v1028_v43  ;;  %v3592_v11 = vld [vmem:[%s4076_s30 + $0x10] sm:$0xff]   ;;  %v802_v37 = vand.u32 15, %v726_v10  ;;  %v717_v10 = vadd.s32 8, %v4034_v58  ;;  %v3598_v43 = vld [vmem:[%s4834_s6 + $0x80] sm:$0xff]   ;;  %s3681_s30 = scalar_lea.vmem %s3680_s29, 2048 }
  0x67   : > { %vm4537_vm1 = vcmp.ge.s32.totalorder %v788_v19, 1  ;;  %v3597_v19 = vld [vmem:[%s4834_s6 + $0x1d0] sm:$0xff]   ;;  %p3683_p12 = scmp.lt.s32.totalorder %s3681_s30, %s3675_s4 }
  0x68   : > { %3177 = vmatmul.mubr.msk.bf16.gmra.mrb[4].mxu1 %vm4436_vm10, %v4426_v17  ;;  %vm953_vm2 = vmpackc.low %vm4537_vm1, %vm4537_vm1  ;;  %vm4553_vm5 = vcmp.ge.s32.totalorder %v802_v37, 1  ;;  %v3603_v37 = vld [vmem:[%s4834_s6 + $0x1e8] sm:$0xff]  }
  0x69   : > { %3185 = vmatpush3.bf16.msra.mxu1 %v3566_v44  ;;  %3315 = vmatpush3.bf16.msra.mxu0 %v3571_v15  ;;  %v1025_v44 = vsel %vm1023_vm13, %v1020_v23, %v1021_v28  ;;  %v3577_v15 = vld [vmem:[%s4834_s6 + $0x190] sm:$0xff]   ;;  %vm4502_vm13 = vcmp.ne.s16.totalorder %v2758_v12, 0  ;;  %v965_v12 = vsel %vm953_vm2, 65537, %v3772_v53  ;;  %vm955_vm7 = vmpackc.low %vm4553_vm5, %vm4553_vm5  ;;  %p3684_p13 = por %p3683_p12, %p3682_p11 }
  0x6a   : > { %3186 = vmatprep.subr.bf16.mxu1 %v3568_v59  ;;  %3324 = vmatprep.subr.bf16.mxu0 %v3573_v1  ;;  %v4497_v35 = vpack.c.bf16 %v1025_v44, %v1026_v62  ;;  %v3574_v28 = vld [vmem:[%s4835_s7 + $0x30] sm:$0xff]   ;;  %v899_v44 = vrot.slane %v4355_v20, 7  ;;  %v2809_v20 = vpack.c.bf16 %v4197_v42, %v4179_v21  ;;  %v900_v21 = vrot.slane %v4275_v63, 7  ;;  %v3595_v42 = vld [vmem:[%s4834_s6 + $0x1c8] sm:$0xff]   ;;  %vm2971_vm5 = vmpackc.low %vm4168_vm12, %vm4168_vm12 }
  0x6b   : > { %3196 = vmatprep.mubr.bf16.mxu1 %v3578_v32  ;;  %v3582_v32 = vld [vmem:[%s4834_s6 + $0x48] sm:$0xff]   ;;  %v3584_v23 = vld [vmem:[%s4834_s6 + $0x50] sm:$0xff]   ;;  %v967_v8 = vsel %vm955_vm7, 65537, %v3772_v53  ;;  %p3685_p0 = pnand %p3684_p13, %p3678_p10 }
  0x6c   : > { %3317 = vmatmul.mubr.msk.bf16.vlgmr.msra.gmra.mrb[0].mxu0 %vm4463_vm15, %v4453_v38  ;;  %v904_v3 = vsel %vm902_vm8, %v899_v44, %v900_v21 }
  0x6d   : > { %3187 = vmatpush3.bf16.msra.mxu1 %v3568_v59  ;;  %3325 = vmatpush3.bf16.msra.mxu0 %v3573_v1  ;;  %v3576_v59 = vld [vmem:[%s4835_s7 + $0x38] sm:$0xff]   ;;  %v3583_v1 = vld [vmem:[%s4834_s6 + $0x1a0] sm:$0xff]  }
  0x6e   : > { %3188 = vmatprep.subr.bf16.mxu1 %v3570_v45  ;;  %3326 = vmatprep.subr.bf16.mxu0 %v3575_v50 }
  0x6f   : > { %3320 = vmatprep.mubr.msk.bf16.mxu0 %vm4477_vm0, %v4472_v55 }
  0x71   : > { %3189 = vmatpush3.bf16.msra.mxu1 %v3570_v45  ;;  %3327 = vmatpush3.bf16.msra.mxu0 %v3575_v50  ;;  %v3587_v45 = vld [vmem:[%s4834_s6 + $0x1b0] sm:$0xff]   ;;  %v3589_v50 = vld [vmem:[%s4834_s6 + $0x1b8] sm:$0xff]  }
  0x72   : > { %3190 = vmatprep.subr.bf16.mxu1 %v3572_v40  ;;  %3328 = vmatprep.subr.bf16.mxu0 %v3577_v15 }
  0x74   : > { %3321 = vmatmul.mubr.msk.bf16.gmra.mrb[4].mxu0 %vm4502_vm13, %v4497_v35 }
  0x75   : > { %3191 = vmatpush3.bf16.msra.mxu1 %v3572_v40  ;;  %3329 = vmatpush3.bf16.msra.mxu0 %v3577_v15  ;;  %v898_v40 = vrot.slane %v4341_v29, 7  ;;  %v3586_v15 = vld [vmem:[%s4834_s6 + $0x58] sm:$0xff]   ;;  %v3591_v29 = vld [vmem:[%s4834_s6 + $0x1c0] sm:$0xff]  }
  0x76   : > { %3192 = vmatprep.subr.bf16.mxu1 %v3574_v28  ;;  %3330 = vmatprep.subr.bf16.mxu0 %v3581_v49 }
  0x77   : > { %3340 = vmatprep.mubr.msk.bf16.mxu0 %vm4373_vm6, %v4346_v56 }
  0x79   : > { %3193 = vmatpush3.bf16.msra.mxu1 %v3574_v28  ;;  %3331 = vmatpush3.bf16.msra.mxu0 %v3581_v49  ;;  %v905_v28 = vsel %vm902_vm8, %v898_v40, %v899_v44  ;;  %v906_v49 = vsel %vm902_vm8, %v897_v51, %v898_v40  ;;  %v3602_v40 = vld [vmem:[%s4834_s6 + $0x90] sm:$0xff]   ;;  %v3607_v44 = vld [vmem:[%s4834_s6 + $0x1f8] sm:$0xff]  }
  0x7a   : > { %3194 = vmatprep.subr.bf16.mxu1 %v3576_v59  ;;  %3332 = vmatprep.subr.bf16.mxu0 %v3583_v1  ;;  %v4587_v51 = vpack.c.bf16 %v905_v28, %v906_v49  ;;  %v3623_v49 = vld [vmem:[%s4834_s6 + $0x238] sm:$0xff]  }
  0x7d   : > { %3195 = vmatpush3.bf16.msra.mxu1 %v3576_v59  ;;  %3333 = vmatpush3.bf16.msra.mxu0 %v3583_v1  ;;  %v2752_v59 = vcombine.low %v965_v12, %v4151_v4  ;;  %v903_v1 = vsel %vm902_vm8, %v900_v21, %v901_v16  ;;  %v3593_v16 = vld [vmem:[%s4834_s6 + $0x70] sm:$0xff]   ;;  %v3609_v12 = vld [vmem:[%s4834_s6 + $0x200] sm:$0xff]  }
  0x7e   : > { %3204 = vmatprep.subr.bf16.mxu1 %v3579_v18  ;;  %3334 = vmatprep.subr.bf16.mxu0 %v3585_v9  ;;  %v920_v7 = vpack.c.bf16 %v903_v1, %v904_v3 }
  0x7f   : > { %vm4592_vm11 = vcmp.ne.s16.totalorder %v2752_v59, 0 }
  0x80   : > { %3197 = vmatmul.mubr.bf16.vlgmr.msra.gmra.mrb[0].mxu1 %v3580_v25  ;;  %v3599_v25 = vld [vmem:[%s4834_s6 + $0x1d8] sm:$0xff]  }
  0x81   : > { %3205 = vmatpush3.bf16.msra.mxu1 %v3579_v18  ;;  %3335 = vmatpush3.bf16.msra.mxu0 %v3585_v9  ;;  %v2753_v18 = vcombine.low %v967_v8, %v4151_v4  ;;  %v3590_v9 = vld [vmem:[%s4834_s6 + $0x68] sm:$0xff]  }
  0x82   : > { %3206 = vmatprep.subr.bf16.mxu1 %v3582_v32  ;;  %3336 = vmatprep.subr.bf16.mxu0 %v3587_v45 }
  0x83   : > { %3200 = vmatprep.mubr.bf16.mxu1 %v3592_v11  ;;  %vm992_vm8 = vcmp.ne.s16.totalorder %v2753_v18, 0  ;;  %v739_v11 = vand.u32 15, %v717_v10 }
  0x85   : > { %3207 = vmatpush3.bf16.msra.mxu1 %v3582_v32  ;;  %3337 = vmatpush3.bf16.msra.mxu0 %v3587_v45  ;;  %v3596_v32 = vld [vmem:[%s4834_s6 + $0x78] sm:$0xff]   ;;  %v3601_v45 = vld [vmem:[%s4834_s6 + $0x1e0] sm:$0xff]   ;;  %vm1000_vm14 = vcmp.le.s32.totalorder %v739_v11, 14 }
  0x86   : > { %3208 = vmatprep.subr.bf16.mxu1 %v3584_v23  ;;  %3338 = vmatprep.subr.bf16.mxu0 %v3589_v50  ;;  %vm1067_vm1 = vmpackc.low %vm1000_vm14, %vm1000_vm14 }
  0x88   : > { %3201 = vmatmul.mubr.bf16.gmra.mrb[4].mxu1 %v3594_v30  ;;  %v1079_v30 = vsel %vm1067_vm1, 65537, %v3772_v53 }
  0x89   : > { %3209 = vmatpush3.bf16.msra.mxu1 %v3584_v23  ;;  %3339 = vmatpush3.bf16.msra.mxu0 %v3589_v50  ;;  %v3600_v23 = vld [vmem:[%s4834_s6 + $0x88] sm:$0xff]   ;;  %v3605_v50 = vld [vmem:[%s4834_s6 + $0x1f0] sm:$0xff]   ;;  %v2754_v62 = vcombine.low %v4151_v4, %v1079_v30 }
  0x8a   : > { %3210 = vmatprep.subr.bf16.mxu1 %v3586_v15  ;;  %3348 = vmatprep.subr.bf16.mxu0 %v3591_v29 }
  0x8b   : > { %3220 = vmatprep.mubr.msk.bf16.mxu1 %vm2808_vm9, %v2809_v20  ;;  %vm1108_vm2 = vcmp.ne.s16.totalorder %v2754_v62, 0  ;;  %v3613_v20 = vld [vmem:[%s4834_s6 + $0x210] sm:$0xff]  }
  0x8c   : > { %3341 = vmatmul.mubr.msk.bf16.vlgmr.msra.gmra.mrb[0].mxu0 %vm4436_vm10, %v4426_v17 }
  0x8d   : > { %3211 = vmatpush3.bf16.msra.mxu1 %v3586_v15  ;;  %3349 = vmatpush3.bf16.msra.mxu0 %v3591_v29  ;;  %v3611_v15 = vld [vmem:[%s4834_s6 + $0x208] sm:$0xff]  }
  0x8e   : > { %3212 = vmatprep.subr.bf16.mxu1 %v3588_v14  ;;  %3350 = vmatprep.subr.bf16.mxu0 %v3595_v42  ;;  %v3608_v29 = vld [vmem:[%s4834_s6 + $0xa8] sm:$0xff]  }
  0x8f   : > { %3344 = vmatprep.mubr.msk.bf16.mxu0 %vm4592_vm11, %v4587_v51 }
  0x91   : > { %3213 = vmatpush3.bf16.msra.mxu1 %v3588_v14  ;;  %3351 = vmatpush3.bf16.msra.mxu0 %v3595_v42 }
  0x92   : > { %3214 = vmatprep.subr.bf16.mxu1 %v3590_v9  ;;  %3352 = vmatprep.subr.bf16.mxu0 %v3597_v19 }
  0x94   : > { %3345 = vmatmul.mubr.msk.bf16.gmra.mrb[4].mxu0 %vm992_vm8, %v920_v7 }
  0x95   : > { %3215 = vmatpush3.bf16.msra.mxu1 %v3590_v9  ;;  %3353 = vmatpush3.bf16.msra.mxu0 %v3597_v19 }
  0x96   : > { %3216 = vmatprep.subr.bf16.mxu1 %v3593_v16  ;;  %3354 = vmatprep.subr.bf16.mxu0 %v3599_v25 }
  0x97   : > { %3364 = vmatprep.mubr.bf16.mxu0 %v4135_v57 }
  0x99   : > { %3217 = vmatpush3.bf16.msra.mxu1 %v3593_v16  ;;  %3355 = vmatpush3.bf16.msra.mxu0 %v3599_v25 }
  0x9a   : > { %3218 = vmatprep.subr.bf16.mxu1 %v3596_v32  ;;  %3356 = vmatprep.subr.bf16.mxu0 %v3601_v45 }
  0x9d   : > { %3219 = vmatpush3.bf16.msra.mxu1 %v3596_v32  ;;  %3357 = vmatpush3.bf16.msra.mxu0 %v3601_v45 }
  0x9e   : > { %3228 = vmatprep.subr.bf16.mxu1 %v3598_v43  ;;  %3358 = vmatprep.subr.bf16.mxu0 %v3603_v37 }
  0xa0   : > { %3221 = vmatmul.mubr.bf16.vlgmr.msra.gmra.mrb[0].mxu1 %v4109_v47  ;;  %v3604_v47 = vld [vmem:[%s4834_s6 + $0x98] sm:$0xff]  }
  0xa1   : > { %3229 = vmatpush3.bf16.msra.mxu1 %v3598_v43  ;;  %3359 = vmatpush3.bf16.msra.mxu0 %v3603_v37 }
  0xa2   : > { %3230 = vmatprep.subr.bf16.mxu1 %v3600_v23  ;;  %3360 = vmatprep.subr.bf16.mxu0 %v3605_v50 }
  0xa3   : > { %3224 = vmatprep.mubr.bf16.mxu1 %v4135_v57  ;;  %v3606_v57 = vld [vmem:[%s4834_s6 + $0xa0] sm:$0xff]  }
  0xa5   : > { %3231 = vmatpush3.bf16.msra.mxu1 %v3600_v23  ;;  %3361 = vmatpush3.bf16.msra.mxu0 %v3605_v50 }
  0xa6   : > { %3232 = vmatprep.subr.bf16.mxu1 %v3602_v40  ;;  %3362 = vmatprep.subr.bf16.mxu0 %v3607_v44 }
  0xa8   : > { %3225 = vmatmul.mubr.bf16.gmra.mrb[4].mxu1 %v4319_v27 }
  0xa9   : > { %3233 = vmatpush3.bf16.msra.mxu1 %v3602_v40  ;;  %3363 = vmatpush3.bf16.msra.mxu0 %v3607_v44 }
  0xaa   : > { %3234 = vmatprep.subr.bf16.mxu1 %v3604_v47  ;;  %3372 = vmatprep.subr.bf16.mxu0 %v3609_v12 }
  0xab   : > { %3244 = vmatprep.mubr.msk.bf16.mxu1 %vm1108_vm2, %v1036_v31  ;;  %v727_v31 = vadd.s32 88, %v4034_v58  ;;  %v3618_v58 = vld [vmem:[%s4834_s6 + $0xd0] sm:$0xff]  }
  0xac   : > { %3365 = vmatmul.mubr.bf16.vlgmr.msra.gmra.mrb[0].mxu0 %v4319_v27  ;;  %v3617_v27 = vld [vmem:[%s4834_s6 + $0x220] sm:$0xff]  }
  0xad   : > { %3235 = vmatpush3.bf16.msra.mxu1 %v3604_v47  ;;  %3373 = vmatpush3.bf16.msra.mxu0 %v3609_v12  ;;  %v809_v28 = vand.u32 15, %v727_v31 }
  0xae   : > { %3236 = vmatprep.subr.bf16.mxu1 %v3606_v57  ;;  %3374 = vmatprep.subr.bf16.mxu0 %v3611_v15 }
  0xaf   : > { %3368 = vmatprep.mubr.bf16.mxu0 %v4389_v0  ;;  %v3621_v0 = vld [vmem:[%s4834_s6 + $0x230] sm:$0xff]   ;;  %vm1010_vm12 = vcmp.le.s32.totalorder %v809_v28, 14 }
  0xb1   : > { %3237 = vmatpush3.bf16.msra.mxu1 %v3606_v57  ;;  %3375 = vmatpush3.bf16.msra.mxu0 %v3611_v15 }
  0xb2   : > { %3238 = vmatprep.subr.bf16.mxu1 %v3608_v29  ;;  %3376 = vmatprep.subr.bf16.mxu0 %v3613_v20 }
  0xb4   : > { %3369 = vmatmul.mubr.msk.bf16.gmra.mrb[4].mxu0 %vm2971_vm5, %v2972_v46  ;;  %v3616_v46 = vld [vmem:[%s4834_s6 + $0xc8] sm:$0xff]  }
  0xb5   : > { %3239 = vmatpush3.bf16.msra.mxu1 %v3608_v29  ;;  %3377 = vmatpush3.bf16.msra.mxu0 %v3613_v20 }
  0xb6   : > { %3240 = vmatprep.subr.bf16.mxu1 %v3610_v5  ;;  %3378 = vmatprep.subr.bf16.mxu0 %v3615_v6 }
  0xb7   : > { %3388 = vmatprep.mubr.msk.bf16.mxu0 %vm4463_vm15, %v4453_v38 }
  0xb9   : > { %3241 = vmatpush3.bf16.msra.mxu1 %v3610_v5  ;;  %3379 = vmatpush3.bf16.msra.mxu0 %v3615_v6 }
  0xba   : > { %3242 = vmatprep.subr.bf16.mxu1 %v3612_v39  ;;  %3380 = vmatprep.subr.bf16.mxu0 %v3617_v27 }
  0xbd   : > { %3243 = vmatpush3.bf16.msra.mxu1 %v3612_v39  ;;  %3381 = vmatpush3.bf16.msra.mxu0 %v3617_v27 }
  0xbe   : > { %3252 = vmatprep.subr.bf16.mxu1 %v3614_v54  ;;  %3382 = vmatprep.subr.bf16.mxu0 %v3619_v61 }
  0xc0   : > { %3245 = vmatmul.mubr.msk.bf16.vlgmr.msra.gmra.mrb[0].mxu1 %vm4300_vm4, %v4371_v24  ;;  %vm1077_vm4 = vmpackc.low %vm1010_vm12, %vm1010_vm12  ;;  %v3622_v24 = vld [vmem:[%s4834_s6 + $0xe0] sm:$0xff]  }
  0xc1   : > { %3253 = vmatpush3.bf16.msra.mxu1 %v3614_v54  ;;  %3383 = vmatpush3.bf16.msra.mxu0 %v3619_v61 }
  0xc2   : > { %3254 = vmatprep.subr.bf16.mxu1 %v3616_v46  ;;  %3384 = vmatprep.subr.bf16.mxu0 %v3621_v0 }
  0xc3   : > { %3248 = vmatprep.mubr.msk.bf16.mxu1 %vm4463_vm15, %v4453_v38  ;;  %v1089_v38 = vsel %vm1077_vm4, 65537, %v3772_v53  ;;  %v3624_v53 = vld [vmem:[%s4834_s6 + $0xe8] sm:$0xff]  }
  0xc4   : > { %v2759_v41 = vcombine.low %v4151_v4, %v1089_v38  ;;  %v3626_v4 = vld [vmem:[%s4834_s6 + $0xf8] sm:$0xff]  }
  0xc5   : > { %3255 = vmatpush3.bf16.msra.mxu1 %v3616_v46  ;;  %3385 = vmatpush3.bf16.msra.mxu0 %v3621_v0 }
  0xc6   : > { %3256 = vmatprep.subr.bf16.mxu1 %v3618_v58  ;;  %3386 = vmatprep.subr.bf16.mxu0 %v3623_v49  ;;  %vm1113_vm15 = vcmp.ne.s16.totalorder %v2759_v41, 0 }
  0xc8   : > { %3249 = vmatmul.mubr.msk.bf16.gmra.mrb[4].mxu1 %vm4477_vm0, %v4472_v55 }
  0xc9   : > { %3257 = vmatpush3.bf16.msra.mxu1 %v3618_v58  ;;  %3387 = vmatpush3.bf16.msra.mxu0 %v3623_v49 }
  0xca   : > { %3258 = vmatprep.subr.bf16.mxu1 %v3620_v13  ;;  %3268 = vmatprep.mubr.msk.bf16.mxu1 %vm4237_vm3, %v4328_v33 }
  0xcc   : > { %3389 = vmatmul.mubr.msk.bf16.vlgmr.msra.gmra.mrb[0].mxu0 %vm4477_vm0, %v4472_v55 }
  0xcd   : > { %3259 = vmatpush3.bf16.msra.mxu1 %v3620_v13  ;;  %3392 = vmatprep.mubr.msk.bf16.mxu0 %vm4502_vm13, %v4497_v35 }
  0xce   : > { %3260 = vmatprep.subr.bf16.mxu1 %v3622_v24 }
  0xd1   : > { %3261 = vmatpush3.bf16.msra.mxu1 %v3622_v24 }
  0xd2   : > { %3262 = vmatprep.subr.bf16.mxu1 %v3624_v53 }
  0xd4   : > { %3393 = vmatmul.mubr.msk.bf16.gmra.mrb[4].mxu0 %vm1113_vm15, %v1041_v22 }
  0xd5   : > { %3263 = vmatpush3.bf16.msra.mxu1 %v3624_v53 }
  0xd6   : > { %3264 = vmatprep.subr.bf16.mxu1 %v3625_v36 }
  0xd9   : > { %3265 = vmatpush3.bf16.msra.mxu1 %v3625_v36 }
  0xda   : > { %3266 = vmatprep.subr.bf16.mxu1 %v3626_v4 }
  0xdd   : > { %3267 = vmatpush3.bf16.msra.mxu1 %v3626_v4 }
  0xe0   : > { %3269 = vmatmul.mubr.msk.bf16.vlgmr.msra.gmra.mrb[0].mxu1 %vm4373_vm6, %v4346_v56 }
  0xe1   : > { %3272 = vmatprep.mubr.msk.bf16.mxu1 %vm4436_vm10, %v4426_v17 }
  0xe8   : > { %3273 = vmatmul.mubr.msk.bf16.gmra.mrb[4].mxu1 %vm4592_vm11, %v4587_v51 }
 0x19f   : > { %v3390_v33 = vpop.f32.mrb[0].mxu0 }
 0x1a0   : > { %v2475_v52 = vpop.f32.mrb[1].mxu0 }
 0x1a1   : > { %v3391_v2 = vpop.f32.mrb[2].mxu0 }
 0x1a2   : > { %v2478_v22 = vpop.f32.mrb[3].mxu0 }
 0x1a7   : > { %v3394_v55 = vpop.f32.mrb[4].mxu0 }
 0x1a8   : > { %v2491_v34 = vpop.f32.mrb[5].mxu0 }
 0x1a9   : > { %v3395_v35 = vpop.f32.mrb[6].mxu0 }
 0x1aa   : > { %v2494_v48 = vpop.f32.mrb[7].mxu0 }
 0x1b3   : > { %v3270_v56 = vpop.f32.mrb[0].mxu1 }
 0x1b4   : > { %v3396_v17 = vadd.f32 %v3390_v33, %v3270_v56  ;;  %v1785_v26 = vpop.f32.mrb[1].mxu1 }
 0x1b5   : > { %v3397_v59 = vadd.f32 %v2475_v52, %v1785_v26  ;;  %v3271_v21 = vpop.f32.mrb[2].mxu1 }
 0x1b6   : > { %v2523_v14 = vadd.f32 %v3396_v17, %v3002_v60  ;;  %v3398_v42 = vadd.f32 %v3391_v2, %v3271_v21  ;;  %v1788_v8 = vpop.f32.mrb[3].mxu1 }
 0x1b7   : > { %v2521_v51 = vadd.f32 %v3397_v59, %v3002_v60  ;;  %v3399_v63 = vadd.f32 %v2478_v22, %v1788_v8 }
 0x1b8   : > { %2531 = vst [vmem:[%s490_s26 + $0x10] sm:$0xff] %v2523_v14  ;;  %v2524_v1 = vadd.f32 %v3398_v42, %v3002_v60 }
 0x1b9   : > { %2529 = vst [vmem:[%s490_s26] sm:$0xff] %v2521_v51  ;;  %v2522_v3 = vadd.f32 %v3399_v63, %v3002_v60 }
 0x1ba   : > { %2532 = vst [vmem:[%s490_s26 + $0x18] sm:$0xff] %v2524_v1 }
 0x1bb   : > { %2530 = vst [vmem:[%s490_s26 + $0x8] sm:$0xff] %v2522_v3  ;;  %v3274_v18 = vpop.f32.mrb[4].mxu1 }
 0x1bc   : > { %v3400_v9 = vadd.f32 %v3394_v55, %v3274_v18  ;;  %v1801_v19 = vpop.f32.mrb[5].mxu1 }
 0x1bd   : > { %v3401_v7 = vadd.f32 %v2491_v34, %v1801_v19  ;;  %v3275_v16 = vpop.f32.mrb[6].mxu1 }
 0x1be   : > { %v2527_v25 = vadd.f32 %v3400_v9, %v3002_v60  ;;  %v3402_v10 = vadd.f32 %v3395_v35, %v3275_v16  ;;  %v1804_v32 = vpop.f32.mrb[7].mxu1 }
 0x1bf   : > { %v2525_v45 = vadd.f32 %v3401_v7, %v3002_v60  ;;  %v3403_v11 = vadd.f32 %v2494_v48, %v1804_v32 }
 0x1c0   : > { %2535 = vst [vmem:[%s490_s26 + $0x30] sm:$0xff] %v2527_v25  ;;  %v2528_v43 = vadd.f32 %v3402_v10, %v3002_v60 }
 0x1c1   : > { %2533 = vst [vmem:[%s490_s26 + $0x20] sm:$0xff] %v2525_v45  ;;  %v2526_v37 = vadd.f32 %v3403_v11, %v3002_v60 }
 0x1c2   : > { %2536 = vst [vmem:[%s490_s26 + $0x38] sm:$0xff] %v2528_v43 }
 0x1c3   : > { %2534 = vst [vmem:[%s490_s26 + $0x28] sm:$0xff] %v2526_v37 }
 0x1c4   : > { %3688 = shalt.err (!%p3685_p0)
}
 0x1c5   : > { %s3689_s18 = scalar_lea.hbm %s4770_s17, 1024  ;;  %s3693_s25 = scalar_lea.hbm %s4837_s9, 8192 }
 0x1c6   : > { %p3690_p1 = scmp.ne.s32.totalorder %s4770_s17, %s3689_s18  ;;  %p3694_p5 = scmp.lt.u32.totalorder %s4770_s17, %s4837_s9 }
 0x1c7   : > { %p3695_p6 = scmp.lt.u32.totalorder %s3693_s25, %s3689_s18  ;;  %p3697_p9 = scmp.lt.u32.totalorder %s3689_s18, %s4770_s17 }
 0x1c8   : > { %p3691_p2 = pnand %p3690_p1, %p3877_p3 }
 0x1c9   : > { %p3696_p7 = por %p3695_p6, %p3694_p5 }
 0x1ca   : > { %p3692_p4 = pneg %p3691_p2 }
 0x1cb   : > { %p3698_p10 = por %p3697_p9, %p3696_p7 }
 0x1cd   : > { %p3699_p11 = pnand %p3698_p10, %p3692_p4 }
 0x1cf   : > { %3702 = shalt.err (!%p3699_p11)
}
 0x1d0   : > { %s3774_s28 = smov 128   ;;  %s3775_s26 = smov 8  }
 0x1d1   : > { %3468 = dma.vmem_to_hbm [thread:$0]  (%p3877_p3), %s4772_s13, 1024, %s4770_s17, %s4776_s12, %s3774_s28, %s3774_s28, %s3775_s26  }
 0x1d2 PF: > { %s4901_s24 = sld [smem:[#allocation5_spill]]  ;;  %p3474_p12 = scmp.ge.s32.totalorder %s3769_s16, 2 }
 0x1d4   : > { %p3471_p13 = pnand %p3474_p12, %p3886_p8 }
 0x1d8   : > { %s2568_s14 = sand.u32 1, %s4901_s24  }
 0x1d9   : > { %s2569_s19 = scalar_lea.sflag [#allocation3], %s2568_s14 }
 0x1da   : > { %3736 = dma.done.wait (!%p3471_p13), %s2569_s19, 1024  }
 0x1db   : > { %3738 = vsyncadd (!%p3471_p13), %s2569_s19, 4294966272  ;;  %s22_s16 = sadd.s32 1, %s3769_s16   ;;  %s4903_s4 = sld [smem:[#allocation6_spill]] }
 0x1dc   : > { %p19_p0 = scmp.ge.s32.totalorder %s22_s16, 10   ;;  %s4904_s11 = sld [smem:[#allocation12_spill]] }
 0x1dd   : > { %s4905_s12 = sld [smem:[#allocation7_spill]]  ;;  %s4906_s13 = sld [smem:[#allocation8_spill]] }
 0x1de   : > { %s4907_s14 = sld [smem:[#allocation9_spill]]  ;;  %s4908_s15 = sld [smem:[#allocation10_spill]] }
 0x1df   : > { %s4909_s30 = smov %s3745_s10  ;;  %21 = sbr.rel (!%p19_p0) target bundleno = 7 (0x7), region = 114 }
 0x1e1   : > { %s4910_s10 = smov %s4903_s4 }
 0x1e6   :  { %2574 = vsyncpa [#allocation3], 1 }
 0x1e7   :  { %2576 = vsyncpa [#allocation3 + $0x1], 1 }

</bundles_post_ra>
